<compile_context>
chip_gen: v6e
topology: v6e:2x2x1
jax: 0.10.0
libtpu: 0.0.40
codegen_flags: <defaults>
</compile_context>

<pallas_src>
import jax
import jax.numpy as jnp
from jax.experimental import pallas as pl
from jax.experimental.pallas import tpu as pltpu

IN_FEATURES = 50
OUT_FEATURES = 9929
SHIFT = 0.44204865  # v1 - (-0.44204865)


def _num_output_blocks():
    """2 blocks on v7x (2 TensorCores/chip) so the 'parallel' axis can shard
    across cores; 1 block on single-TC chips (v5e/v6e) to avoid per-step
    overhead on a ~1 us kernel."""
    try:
        kind = jax.devices()[0].device_kind.lower()
        if "v7" in kind:
            return 2
    except Exception:
        pass
    return 1


def _linear_relu_kernel(x_ref, w_ref, b_ref, o_ref):
    # x_ref: (B, K) f32 full    w_ref: (K, TN) bf16 column tile of W^T
    # b_ref: (1, TN) f32 tile   o_ref: (B, TN) f32 tile (last block partial/masked)
    w = w_ref[...].astype(jnp.float32)  # compute is negligible; HBM bytes stay bf16
    acc = jnp.dot(x_ref[...], w, preferred_element_type=jnp.float32)
    o_ref[...] = jnp.maximum(acc + b_ref[...], 0.0).astype(o_ref.dtype)


def prepare_params(w, b, *, n_blocks):
    """One-time parameter prep (NOT in the per-call hot path).

    w: (N, K) f32 PyTorch-layout weight, b: (N,) f32 bias.
    Returns:
      w_p: (K, n_pad) bf16  == W^T, zero-padded to a lane-multiple width,
      b_p: (1, n_pad) f32   == bias + SHIFT (padded region 0 -> relu stays 0),
      tn : per-block output width (multiple of 128), n_pad = n_blocks * tn.
    K is intentionally NOT padded (would only add HBM bytes).
    """
    N, K = w.shape
    tn = pl.cdiv(pl.cdiv(N, n_blocks), 128) * 128
    n_pad = n_blocks * tn
    w_p = jnp.zeros((K, n_pad), jnp.bfloat16).at[:, :N].set(w.T.astype(jnp.bfloat16))
    b_p = jnp.zeros((1, n_pad), jnp.float32).at[0, :N].set(b + SHIFT)
    return w_p, b_p, tn


def linear_relu(x, w_p, b_p, n_out, tn):
    """x: (B, K) f32, w_p: (K, n_pad) bf16, b_p: (1, n_pad) f32 -> (B, n_out) f32."""
    B, K = x.shape
    Kw, n_pad = w_p.shape
    assert K == Kw and b_p.shape == (1, n_pad) and n_pad % tn == 0
    n_blocks = n_pad // tn

    cost = pl.CostEstimate(
        flops=2 * B * K * n_pad,
        transcendentals=0,
        bytes_accessed=(x.size * 4 + w_p.size * 2 + b_p.size * 4 + B * n_out * 4),
    )

    # Output is declared at its true width; the last block is partial and
    # Pallas masks the out-of-bounds tail lanes (no post-kernel slice needed).
    return pl.pallas_call(
        _linear_relu_kernel,
        out_shape=jax.ShapeDtypeStruct((B, n_out), jnp.float32),
        grid_spec=pltpu.PrefetchScalarGridSpec(
            num_scalar_prefetch=0,
            grid=(n_blocks,),
            in_specs=[
                pl.BlockSpec((B, K), lambda j: (0, 0)),    # x: full, resident
                pl.BlockSpec((K, tn), lambda j: (0, j)),   # W^T column tile (bf16)
                pl.BlockSpec((1, tn), lambda j: (0, j)),   # (bias + SHIFT) tile (f32)
            ],
            out_specs=pl.BlockSpec((B, tn), lambda j: (0, j)),
        ),
        compiler_params=pltpu.CompilerParams(
            # On v7x the 2-block "parallel" axis shards across the 2 TCs;
            # on v5e/v6e there is a single block so semantics are moot.
            dimension_semantics=("parallel",),
        ),
        cost_estimate=cost,
    )(x, w_p, b_p)


def reference_f32(x, w, b):
    return jnp.maximum(x @ w.T + b + SHIFT, 0.0)


def reference_quantized(x, w_p, b_p, n_out):
    # Same math as the kernel (bf16-stored weight, f32 accumulate).
    return jnp.maximum(x @ w_p.astype(jnp.float32) + b_p, 0.0)[:, :n_out]


if __name__ == "__main__":
    key = jax.random.PRNGKey(0)
    kx, kw, kb = jax.random.split(key, 3)

    batch = 1  # matches x0 = torch.randn(1, 50)
    x = jax.random.normal(kx, (batch, IN_FEATURES), dtype=jnp.float32)

    # Deterministic Linear(50, 9929) params (PyTorch-style uniform bound 1/sqrt(fan_in)).
    bound = 1.0 / (IN_FEATURES ** 0.5)
    w1 = jax.random.uniform(kw, (OUT_FEATURES, IN_FEATURES),
                            minval=-bound, maxval=bound, dtype=jnp.float32)
    b1 = jax.random.uniform(kb, (OUT_FEATURES,),
                            minval=-bound, maxval=bound, dtype=jnp.float32)

    # One-time parameter preparation (bf16 cast + padding + SHIFT fold), outside hot path.
    n_blocks = _num_output_blocks()
    w_p, b_p, tn = prepare_params(w1, b1, n_blocks=n_blocks)
    w_p, b_p = jax.block_until_ready((w_p, b_p))

    fwd = jax.jit(lambda xx: linear_relu(xx, w_p, b_p, OUT_FEATURES, tn))
    out = jax.block_until_ready(fwd(x))

    assert out.shape == (batch, OUT_FEATURES)

    # Strict check vs a reference doing exactly the kernel's (bf16-weight) math.
    ref_q = reference_quantized(x, w_p, b_p, OUT_FEATURES)
    assert jnp.allclose(out, ref_q, atol=5e-3, rtol=5e-3)

    # Looser check vs the full-f32 PyTorch-equivalent reference (weight bf16 rounding).
    ref_f = reference_f32(x, w1, b1)
    assert jnp.allclose(out, ref_f, atol=3e-2, rtol=3e-2)

    print("KERNEL_OK")
</pallas_src>

<mosaic_0001>
module attributes {stable_mosaic.version = 11 : i64} {
  func.func @_linear_relu_kernel(%arg0: i32, %arg1: memref<1x50xf32, #tpu.memory_space<vmem>>, %arg2: memref<50x9984xbf16, #tpu.memory_space<vmem>>, %arg3: memref<1x9984xf32, #tpu.memory_space<vmem>>, %arg4: memref<1x9984xf32, #tpu.memory_space<vmem>>) attributes {dimension_semantics = [#tpu.dimension_semantics<parallel>], iteration_bounds = array<i64: 1>, scalar_prefetch = 0 : i64, scratch_operands = 0 : i64, tpu.core_type = #tpu.core_type<tc>, window_params = [{pipeline_mode = #tpu.pipeline_mode<synchronous>, transform_indices = @transform_0, window_bounds = array<i64: 1, 50>}, {transform_indices = @transform_1, window_bounds = array<i64: 50, 9984>}, {transform_indices = @transform_2, window_bounds = array<i64: 1, 9984>}, {transform_indices = @transform_3, window_bounds = array<i64: 1, 9984>}]} {
    %c0 = arith.constant 0 : index
    %c0_0 = arith.constant 0 : index
    %0 = vector.load %arg2[%c0, %c0_0] : memref<50x9984xbf16, #tpu.memory_space<vmem>>, vector<50x9984xbf16>
    %1 = arith.extf %0 : vector<50x9984xbf16> to vector<50x9984xf32>
    %c0_1 = arith.constant 0 : index
    %c0_2 = arith.constant 0 : index
    %2 = vector.load %arg1[%c0_1, %c0_2] : memref<1x50xf32, #tpu.memory_space<vmem>>, vector<1x50xf32>
    %cst = arith.constant dense<0.000000e+00> : vector<1x9984xf32>
    %3 = tpu.matmul %2, %1, %cst {dimension_numbers = #tpu.dot_dimension_numbers<[1], [0], [0], [1], [0, 0, 1, 1], [], []>} : vector<1x50xf32>, vector<50x9984xf32>, vector<1x9984xf32> -> vector<1x9984xf32>
    %c0_3 = arith.constant 0 : index
    %c0_4 = arith.constant 0 : index
    %4 = vector.load %arg3[%c0_3, %c0_4] : memref<1x9984xf32, #tpu.memory_space<vmem>>, vector<1x9984xf32>
    %5 = arith.addf %3, %4 : vector<1x9984xf32>
    %cst_5 = arith.constant 0.000000e+00 : f32
    %6 = vector.broadcast %cst_5 : f32 to vector<1x9984xf32>
    %7 = arith.maximumf %5, %6 : vector<1x9984xf32>
    %c0_6 = arith.constant 0 : index
    %c0_7 = arith.constant 0 : index
    %8 = vector.load %arg4[%c0_6, %c0_7] : memref<1x9984xf32, #tpu.memory_space<vmem>>, vector<1x9984xf32>
    tpu.vector_store %arg4[%c0_6, %c0_7], %7 {strides = array<i32>} : memref<1x9984xf32, #tpu.memory_space<vmem>>, vector<1x9984xf32>,
    return
  }
  func.func @transform_0(%arg0: i32) -> (i32, i32) {
    %c0_i32 = arith.constant 0 : i32
    %c0_i32_0 = arith.constant 0 : i32
    %c0_i32_1 = arith.constant 0 : i32
    return %c0_i32, %c0_i32_0 : i32, i32
  }
  func.func @transform_1(%arg0: i32) -> (i32, i32) {
    %c0_i32 = arith.constant 0 : i32
    %c0_i32_0 = arith.constant 0 : i32
    return %c0_i32, %arg0 : i32, i32
  }
  func.func @transform_2(%arg0: i32) -> (i32, i32) {
    %c0_i32 = arith.constant 0 : i32
    %c0_i32_0 = arith.constant 0 : i32
    return %c0_i32, %arg0 : i32, i32
  }
  func.func @transform_3(%arg0: i32) -> (i32, i32) {
    %c0_i32 = arith.constant 0 : i32
    %c0_i32_0 = arith.constant 0 : i32
    return %c0_i32, %arg0 : i32, i32
  }
}

</mosaic_0001>

<bundles_post_ra>
// kernel: _lambda_.1
= control target key start
LH: loop header
LB: loop body
LE: loop exit
PB: predicated region body
PF: predicated region fallthrough
CT: control target
= control target key end

     0   :  { %8 = vsyncpa [#allocation3], 0  ;;  %s5635_s0 = inlined_call_operand.hbm [shape: f32[1,50], index: 0, kind: input, shape index: {}]   ;;  %s5636_s1 = inlined_call_operand.hbm [shape: bf16[50,9984], index: 1, kind: input, shape index: {}]   ;;  %s5637_s2 = inlined_call_operand.hbm [shape: f32[1,9984], index: 2, kind: input, shape index: {}]   ;;  %s5638_s3 = inlined_call_operand.hbm [shape: f32[1,9929], index: 3, kind: output, shape index: {}]  }
   0x1   :  { %9 = vsyncpa [#allocation6], 0 }
   0x2   :  { %10 = vsyncpa [#allocation4], 0  ;;  %s5180_s12 = smov [#allocation5]  }
   0x3   :  { %s26_s13 = sshll.u32 %s5180_s12, 4  ;;  %s27_s13 = int_to_ptr.vmem [resolvable:$true] %s26_s13 }
   0x4   :  { %s5102_s14 = scalar_lea.vmem %s27_s13, 34944  ;;  %p5107_p1 = scmp.lt.s32.totalorder %s27_s13, %s27_s13 }
   0x5   :  { %p5103_p0 = scmp.ne.s32.totalorder %s27_s13, %s5102_s14  ;;  %p5108_p2 = scmp.lt.s32.totalorder %s5102_s14, %s5102_s14 }
   0x7   :  { %p5109_p3 = por %p5108_p2, %p5107_p1 }
   0x9   :  { %p5110_p4 = pnand %p5109_p3, %p5103_p0 }
   0xb   :  { %5113 = shalt.err (!%p5110_p4)
}
   0xc   :  { %s5181_s15 = smov 4992   ;;  %s5182_s16 = smov 312  }
   0xd   :  { %32 = dma.hbm_to_vmem [thread:$0]  %s5636_s1, 34944, %s27_s13, [#allocation6], %s5181_s15, %s5181_s15, %s5182_s16  }
   0xe   :  { %s5183_s19 = smov [#allocation2]   ;;  %s5184_s21 = smov [#allocation7]  }
   0xf   :  { %s17_s20 = sshll.u32 %s5183_s19, 4  ;;  %s39_s22 = sshll.u32 %s5184_s21, 4  ;;  %s18_s20 = int_to_ptr.vmem [resolvable:$true] %s17_s20  ;;  %s40_s22 = int_to_ptr.vmem [resolvable:$true] %s39_s22 }
  0x10   :  { %s5122_s23 = scalar_lea.vmem %s18_s20, 16  ;;  %s5126_s24 = scalar_lea.vmem %s18_s20, 32 }
  0x11   :  { %p5123_p5 = scmp.ne.s32.totalorder %s18_s20, %s5122_s23  ;;  %p5127_p6 = scmp.lt.s32.totalorder %s18_s20, %s18_s20 }
  0x12   :  { %p5128_p7 = scmp.lt.s32.totalorder %s5126_s24, %s5122_s23 }
  0x14   :  { %p5129_p8 = por %p5128_p7, %p5127_p6 }
  0x16   :  { %p5130_p9 = pnand %p5129_p8, %p5123_p5 }
  0x18   :  { %5133 = shalt.err (!%p5130_p9)
}
  0x19   :  { %20 = dma.hbm_to_vmem [thread:$0]  %s5635_s0, 16, %s18_s20, [#allocation3]  }
  0x1a   :  { %s5142_s27 = scalar_lea.vmem %s40_s22, 1248  ;;  %p5147_p11 = scmp.lt.s32.totalorder %s40_s22, %s40_s22 }
  0x1b   :  { %p5143_p10 = scmp.ne.s32.totalorder %s40_s22, %s5142_s27  ;;  %p5148_p12 = scmp.lt.s32.totalorder %s5142_s27, %s5142_s27 }
  0x1d   :  { %p5149_p13 = por %p5148_p12, %p5147_p11 }
  0x1f   :  { %p5150_p0 = pnand %p5149_p13, %p5143_p10 }
  0x21   :  { %5153 = shalt.err (!%p5150_p0)
}
  0x22   :  { %42 = dma.hbm_to_vmem [thread:$0]  %s5637_s2, 1248, %s40_s22, [#allocation6]  }
  0x23   :  { %5174 = dma.done.wait [#allocation3], 16  }
  0x24   :  { %5175 = vsyncadd [#allocation3], 4294967280 }
  0x25   :  { %5176 = dma.done.wait [#allocation6], 36192  }
  0x26   :  { %5177 = vsyncadd [#allocation6], 4294931104  ;;  %v5185_v0 = vmov 0.0   ;;  %v286_v1 = vld [vmem:[#allocation5 + $0x750] sm:$0x11]  ;;  %vm1286_vm0 = vcmask 1041408  }
  0x27   :  { %1585 = vmatprep.mubr.f32.mxu0 %v5185_v0  ;;  %1656 = vmatprep.mubr.f32.mxu1 %v5185_v0  ;;  %v287_v2 = vld [vmem:[#allocation5 + $0x758] sm:$0x11]  ;;  %v793_v4 = vunpack.c.l.bf16 %v286_v1  ;;  %v794_v5 = vunpack.c.h.bf16 %v286_v1  ;;  %v248_v8 = vld [vmem:[#allocation5 + $0x620] sm:$0xff]  ;;  %v209_v10 = vld [vmem:[#allocation5 + $0x4e8] sm:$0xff]  ;;  %vm1282_vm1 = vcmask 408576   ;;  %s5187_s0 = smov [#allocation8]  }
  0x28   :  { %v247_v3 = vld [vmem:[#allocation5 + $0x618] sm:$0xff]  ;;  %v795_v6 = vunpack.c.l.bf16 %v287_v2  ;;  %v796_v7 = vunpack.c.h.bf16 %v287_v2  ;;  %v208_v9 = vld [vmem:[#allocation5 + $0x4e0] sm:$0xff]  ;;  %v718_v12 = vunpack.c.h.bf16 %v248_v8  ;;  %v717_v14 = vunpack.c.l.bf16 %v248_v8  ;;  %v169_v15 = vld [vmem:[#allocation5 + $0x3a8] sm:$0xff]  ;;  %s4957_s2 = sshll.u32 %s5187_s0, 4  ;;  %s4958_s2 = int_to_ptr.vmem [resolvable:$true] %s4957_s2 }
  0x29   :  { %v716_v11 = vunpack.c.h.bf16 %v247_v3  ;;  %v715_v13 = vunpack.c.l.bf16 %v247_v3  ;;  %v170_v16 = vld [vmem:[#allocation5 + $0x3b0] sm:$0xff]  ;;  %4967 = vmatprep.subr.msk.mxu0 %vm1286_vm0, %v794_v5  ;;  %v638_v17 = vunpack.c.h.bf16 %v208_v9  ;;  %v640_v18 = vunpack.c.h.bf16 %v209_v10  ;;  %v131_v22 = vld [vmem:[#allocation5 + $0x278] sm:$0xff]  ;;  %v92_v28 = vld [vmem:[#allocation5 + $0x140] sm:$0xff]  ;;  %s5154_s29 = scalar_lea.vmem %s4958_s2, 1248  ;;  %p5159_p2 = scmp.lt.s32.totalorder %s4958_s2, %s4958_s2 }
  0x2a   :  { %4970 = vmatprep.subr.msk.mxu1 %vm1286_vm0, %v796_v7  ;;  %4968 = vmatpush1.msk.msra.mxu0 %vm1286_vm0, %v793_v4  ;;  %v637_v19 = vunpack.c.l.bf16 %v208_v9  ;;  %v639_v20 = vunpack.c.l.bf16 %v209_v10  ;;  %v130_v21 = vld [vmem:[#allocation5 + $0x270] sm:$0xff]  ;;  %v560_v23 = vunpack.c.h.bf16 %v169_v15  ;;  %v562_v24 = vunpack.c.h.bf16 %v170_v16  ;;  %v91_v27 = vld [vmem:[#allocation5 + $0x138] sm:$0xff]  ;;  %v52_v33 = vld [vmem:[#allocation5] sm:$0xff]  ;;  %p5155_p1 = scmp.ne.s32.totalorder %s4958_s2, %s5154_s29  ;;  %p5160_p3 = scmp.lt.s32.totalorder %s5154_s29, %s5154_s29 }
  0x2b   :  { %4971 = vmatpush1.msk.msra.mxu1 %vm1286_vm0, %v795_v6  ;;  %1541 = vmatprep.subr.mxu0 %v716_v11  ;;  %v559_v25 = vunpack.c.l.bf16 %v169_v15  ;;  %v561_v26 = vunpack.c.l.bf16 %v170_v16  ;;  %v482_v29 = vunpack.c.h.bf16 %v130_v21  ;;  %v484_v30 = vunpack.c.h.bf16 %v131_v22  ;;  %v53_v34 = vld [vmem:[#allocation5 + $0x8] sm:$0xff]  ;;  %v288_v41 = vld [vmem:[#allocation5 + $0x760] sm:$0x11]  ;;  %v250_v46 = vld [vmem:[#allocation5 + $0x630] sm:$0xff] }
  0x2c   :  { %1612 = vmatprep.subr.mxu1 %v718_v12  ;;  %1542 = vmatpush1.msra.mxu0 %v715_v13  ;;  %v481_v31 = vunpack.c.l.bf16 %v130_v21  ;;  %v483_v32 = vunpack.c.l.bf16 %v131_v22  ;;  %v404_v35 = vunpack.c.h.bf16 %v91_v27  ;;  %v406_v36 = vunpack.c.h.bf16 %v92_v28  ;;  %v289_v42 = vld [vmem:[#allocation5 + $0x768] sm:$0x11]  ;;  %v5223_v47 = vld [vmem:[#allocation2] sm:$0x1]  ;;  %v210_v52 = vld [vmem:[#allocation5 + $0x4f0] sm:$0xff]  ;;  %p5161_p4 = por %p5160_p3, %p5159_p2 }
  0x2d   :  { %1613 = vmatpush1.msra.mxu1 %v717_v14  ;;  %1543 = vmatprep.subr.mxu0 %v638_v17  ;;  %v403_v37 = vunpack.c.l.bf16 %v91_v27  ;;  %v405_v38 = vunpack.c.l.bf16 %v92_v28  ;;  %v326_v39 = vunpack.c.h.bf16 %v52_v33  ;;  %v328_v40 = vunpack.c.h.bf16 %v53_v34  ;;  %v249_v45 = vld [vmem:[#allocation5 + $0x628] sm:$0xff]  ;;  %v211_v53 = vld [vmem:[#allocation5 + $0x4f8] sm:$0xff]  ;;  %v172_v59 = vld [vmem:[#allocation5 + $0x3c0] sm:$0xff] }
  0x2e   :  { %1614 = vmatprep.subr.mxu1 %v640_v18  ;;  %1544 = vmatpush1.msra.mxu0 %v637_v19  ;;  %v325_v43 = vunpack.c.l.bf16 %v52_v33  ;;  %v327_v44 = vunpack.c.l.bf16 %v53_v34  ;;  %v798_v48 = vunpack.c.h.bf16 %v288_v41  ;;  %v800_v49 = vunpack.c.h.bf16 %v289_v42  ;;  %v171_v58 = vld [vmem:[#allocation5 + $0x3b8] sm:$0xff]  ;;  %v132_v1 = vld [vmem:[#allocation5 + $0x280] sm:$0xff]  ;;  %v133_v2 = vld [vmem:[#allocation5 + $0x288] sm:$0xff]  ;;  %p5162_p5 = pnand %p5161_p4, %p5155_p1 }
  0x2f   :  { %1615 = vmatpush1.msra.mxu1 %v639_v20  ;;  %1545 = vmatprep.subr.mxu0 %v560_v23  ;;  %v797_v50 = vunpack.c.l.bf16 %v288_v41  ;;  %v799_v51 = vunpack.c.l.bf16 %v289_v42  ;;  %v720_v54 = vunpack.c.h.bf16 %v249_v45  ;;  %v722_v55 = vunpack.c.h.bf16 %v250_v46  ;;  %v93_v7 = vld [vmem:[#allocation5 + $0x148] sm:$0xff]  ;;  %v94_v8 = vld [vmem:[#allocation5 + $0x150] sm:$0xff]  ;;  %v55_v14 = vld [vmem:[#allocation5 + $0x18] sm:$0xff] }
  0x30   :  { %1616 = vmatprep.subr.mxu1 %v562_v24  ;;  %1546 = vmatpush1.msra.mxu0 %v559_v25  ;;  %v719_v56 = vunpack.c.l.bf16 %v249_v45  ;;  %v721_v57 = vunpack.c.l.bf16 %v250_v46  ;;  %v642_v60 = vunpack.c.h.bf16 %v210_v52  ;;  %v644_v61 = vunpack.c.h.bf16 %v211_v53  ;;  %v54_v13 = vld [vmem:[#allocation5 + $0x10] sm:$0xff]  ;;  %v291_v23 = vld [vmem:[#allocation5 + $0x778] sm:$0x11] }
  0x31   :  { %1617 = vmatpush1.msra.mxu1 %v561_v26  ;;  %1547 = vmatprep.subr.mxu0 %v482_v29  ;;  %v641_v62 = vunpack.c.l.bf16 %v210_v52  ;;  %v643_v63 = vunpack.c.l.bf16 %v211_v53  ;;  %v564_v3 = vunpack.c.h.bf16 %v171_v58  ;;  %v566_v4 = vunpack.c.h.bf16 %v172_v59  ;;  %v290_v22 = vld [vmem:[#allocation5 + $0x770] sm:$0x11]  ;;  %v251_v25 = vld [vmem:[#allocation5 + $0x638] sm:$0xff]  ;;  %v252_v26 = vld [vmem:[#allocation5 + $0x640] sm:$0xff] }
  0x32   :  { %1618 = vmatprep.subr.mxu1 %v484_v30  ;;  %1548 = vmatpush1.msra.mxu0 %v481_v31  ;;  %v563_v5 = vunpack.c.l.bf16 %v171_v58  ;;  %v565_v6 = vunpack.c.l.bf16 %v172_v59  ;;  %v486_v9 = vunpack.c.h.bf16 %v132_v1  ;;  %v488_v10 = vunpack.c.h.bf16 %v133_v2  ;;  %v212_v31 = vld [vmem:[#allocation5 + $0x500] sm:$0xff] }
  0x33   :  { %1619 = vmatpush1.msra.mxu1 %v483_v32  ;;  %1549 = vmatprep.subr.mxu0 %v404_v35  ;;  %v485_v11 = vunpack.c.l.bf16 %v132_v1  ;;  %v487_v12 = vunpack.c.l.bf16 %v133_v2  ;;  %v408_v15 = vunpack.c.h.bf16 %v93_v7  ;;  %v410_v16 = vunpack.c.h.bf16 %v94_v8  ;;  %v213_v32 = vld [vmem:[#allocation5 + $0x508] sm:$0xff]  ;;  %v292_v2 = vld [vmem:[#allocation5 + $0x780] sm:$0x11] }
  0x34   :  { %1620 = vmatprep.subr.mxu1 %v406_v36  ;;  %1550 = vmatpush1.msra.mxu0 %v403_v37  ;;  %v407_v17 = vunpack.c.l.bf16 %v93_v7  ;;  %v409_v18 = vunpack.c.l.bf16 %v94_v8  ;;  %v330_v19 = vunpack.c.h.bf16 %v54_v13  ;;  %v332_v20 = vunpack.c.h.bf16 %v55_v14  ;;  %v173_v37 = vld [vmem:[#allocation5 + $0x3c8] sm:$0xff] }
  0x35   :  { %1621 = vmatpush1.msra.mxu1 %v405_v38  ;;  %1551 = vmatprep.subr.mxu0 %v326_v39  ;;  %v329_v21 = vunpack.c.l.bf16 %v54_v13  ;;  %v331_v24 = vunpack.c.l.bf16 %v55_v14  ;;  %v802_v27 = vunpack.c.h.bf16 %v290_v22  ;;  %v804_v28 = vunpack.c.h.bf16 %v291_v23  ;;  %v174_v38 = vld [vmem:[#allocation5 + $0x3d0] sm:$0xff] }
  0x36   :  { %1622 = vmatprep.subr.mxu1 %v328_v40  ;;  %1552 = vmatpush1.msra.mxu0 %v325_v43  ;;  %v801_v29 = vunpack.c.l.bf16 %v290_v22  ;;  %v803_v30 = vunpack.c.l.bf16 %v291_v23  ;;  %v724_v33 = vunpack.c.h.bf16 %v251_v25  ;;  %v726_v34 = vunpack.c.h.bf16 %v252_v26  ;;  %v134_v43 = vld [vmem:[#allocation5 + $0x290] sm:$0xff]  ;;  %v136_v23 = vld [vmem:[#allocation5 + $0x2a0] sm:$0xff] }
  0x37   :  { %1623 = vmatpush1.msra.mxu1 %v327_v44  ;;  %4969 = vmatmul.mubr.msk.f32.vlgmr.msra.gmra.mxu0 %vm1282_vm1, %v5223_v47  ;;  %v723_v35 = vunpack.c.l.bf16 %v251_v25  ;;  %v725_v36 = vunpack.c.l.bf16 %v252_v26  ;;  %v646_v39 = vunpack.c.h.bf16 %v212_v31  ;;  %v648_v40 = vunpack.c.h.bf16 %v213_v32  ;;  %v135_v44 = vld [vmem:[#allocation5 + $0x298] sm:$0xff] }
  0x38   :  { %4972 = vmatmul.mubr.msk.f32.vlgmr.msra.gmra.mxu1 %vm1282_vm1, %v5223_v47  ;;  %4973 = vmatprep.subr.msk.mxu0 %vm1286_vm0, %v798_v48  ;;  %v645_v41 = vunpack.c.l.bf16 %v212_v31  ;;  %v647_v42 = vunpack.c.l.bf16 %v213_v32  ;;  %v568_v45 = vunpack.c.h.bf16 %v173_v37  ;;  %v570_v46 = vunpack.c.h.bf16 %v174_v38 }
  0x39   :  { %4976 = vmatprep.subr.msk.mxu1 %vm1286_vm0, %v800_v49  ;;  %4974 = vmatpush1.msk.msra.mxu0 %vm1286_vm0, %v797_v50  ;;  %v567_v48 = vunpack.c.l.bf16 %v173_v37  ;;  %v569_v49 = vunpack.c.l.bf16 %v174_v38  ;;  %v95_v50 = vld [vmem:[#allocation5 + $0x158] sm:$0xff]  ;;  %v490_v52 = vunpack.c.h.bf16 %v134_v43  ;;  %v492_v53 = vunpack.c.h.bf16 %v135_v44 }
  0x3a   :  { %4977 = vmatpush1.msk.msra.mxu1 %vm1286_vm0, %v799_v51  ;;  %1683 = vmatprep.subr.mxu0 %v720_v54  ;;  %v96_v51 = vld [vmem:[#allocation5 + $0x160] sm:$0xff]  ;;  %v489_v54 = vunpack.c.l.bf16 %v134_v43  ;;  %v412_v58 = vunpack.c.h.bf16 %v95_v50  ;;  %v806_v7 = vunpack.c.h.bf16 %v292_v2  ;;  %v494_v31 = vunpack.c.h.bf16 %v136_v23 }
  0x3b   :  { %1754 = vmatprep.subr.mxu1 %v722_v55  ;;  %1684 = vmatpush1.msra.mxu0 %v719_v56  ;;  %v491_v55 = vunpack.c.l.bf16 %v135_v44  ;;  %v56_v56 = vld [vmem:[#allocation5 + $0x20] sm:$0xff]  ;;  %v414_v59 = vunpack.c.h.bf16 %v96_v51  ;;  %v294_v44 = vld [vmem:[#allocation5 + $0x790] sm:$0x11] }
  0x3c   :  { %1755 = vmatpush1.msra.mxu1 %v721_v57  ;;  %1685 = vmatprep.subr.mxu0 %v642_v60  ;;  %v57_v57 = vld [vmem:[#allocation5 + $0x28] sm:$0xff]  ;;  %v411_v60 = vunpack.c.l.bf16 %v95_v50  ;;  %v333_v1 = vunpack.c.l.bf16 %v56_v56  ;;  %v810_v50 = vunpack.c.h.bf16 %v294_v44 }
  0x3d   :  { %1756 = vmatprep.subr.mxu1 %v644_v61  ;;  %1686 = vmatpush1.msra.mxu0 %v641_v62  ;;  %v413_v61 = vunpack.c.l.bf16 %v96_v51  ;;  %v334_v62 = vunpack.c.h.bf16 %v56_v56 }
  0x3e   :  { %1757 = vmatpush1.msra.mxu1 %v643_v63  ;;  %1687 = vmatprep.subr.mxu0 %v564_v3  ;;  %v336_v63 = vunpack.c.h.bf16 %v57_v57  ;;  %v293_v3 = vld [vmem:[#allocation5 + $0x788] sm:$0x11] }
  0x3f   :  { %1758 = vmatprep.subr.mxu1 %v566_v4  ;;  %1688 = vmatpush1.msra.mxu0 %v563_v5  ;;  %v335_v4 = vunpack.c.l.bf16 %v57_v57  ;;  %v253_v5 = vld [vmem:[#allocation5 + $0x648] sm:$0xff]  ;;  %v808_v8 = vunpack.c.h.bf16 %v293_v3 }
  0x40   :  { %1759 = vmatpush1.msra.mxu1 %v565_v6  ;;  %1689 = vmatprep.subr.mxu0 %v486_v9  ;;  %v254_v6 = vld [vmem:[#allocation5 + $0x650] sm:$0xff]  ;;  %v805_v9 = vunpack.c.l.bf16 %v292_v2  ;;  %v728_v13 = vunpack.c.h.bf16 %v253_v5 }
  0x41   :  { %1760 = vmatprep.subr.mxu1 %v488_v10  ;;  %1690 = vmatpush1.msra.mxu0 %v485_v11  ;;  %v807_v10 = vunpack.c.l.bf16 %v293_v3  ;;  %v214_v11 = vld [vmem:[#allocation5 + $0x510] sm:$0xff]  ;;  %v730_v14 = vunpack.c.h.bf16 %v254_v6 }
  0x42   :  { %1761 = vmatpush1.msra.mxu1 %v487_v12  ;;  %1691 = vmatprep.subr.mxu0 %v408_v15  ;;  %v215_v12 = vld [vmem:[#allocation5 + $0x518] sm:$0xff]  ;;  %v727_v15 = vunpack.c.l.bf16 %v253_v5  ;;  %v138_v3 = vld [vmem:[#allocation5 + $0x2b0] sm:$0xff] }
  0x43   :  { %1762 = vmatprep.subr.mxu1 %v410_v16  ;;  %1692 = vmatpush1.msra.mxu0 %v407_v17  ;;  %v729_v16 = vunpack.c.l.bf16 %v254_v6  ;;  %v175_v17 = vld [vmem:[#allocation5 + $0x3d8] sm:$0xff]  ;;  %v651_v22 = vunpack.c.l.bf16 %v215_v12 }
  0x44   :  { %1763 = vmatpush1.msra.mxu1 %v409_v18  ;;  %1693 = vmatprep.subr.mxu0 %v330_v19  ;;  %v176_v18 = vld [vmem:[#allocation5 + $0x3e0] sm:$0xff]  ;;  %v650_v19 = vunpack.c.h.bf16 %v214_v11  ;;  %v572_v25 = vunpack.c.h.bf16 %v175_v17 }
  0x45   :  { %1764 = vmatprep.subr.mxu1 %v332_v20  ;;  %1694 = vmatpush1.msra.mxu0 %v329_v21  ;;  %v652_v20 = vunpack.c.h.bf16 %v215_v12  ;;  %v649_v21 = vunpack.c.l.bf16 %v214_v11  ;;  %v574_v26 = vunpack.c.h.bf16 %v176_v18  ;;  %v498_v11 = vunpack.c.h.bf16 %v138_v3 }
  0x46   :  { %1727 = vmatprep.mubr.f32.mxu0 %v5185_v0  ;;  %1765 = vmatpush1.msra.mxu1 %v331_v24  ;;  %v137_v24 = vld [vmem:[#allocation5 + $0x2a8] sm:$0xff] }
  0x47   :  { %1798 = vmatprep.mubr.f32.mxu1 %v5185_v0  ;;  %4975 = vmatmul.mubr.msk.f32.vlgmr.msra.gmra.mxu0 %vm1282_vm1, %v5223_v47  ;;  %v496_v32 = vunpack.c.h.bf16 %v137_v24 }
  0x48   :  { %4978 = vmatmul.mubr.msk.f32.vlgmr.msra.gmra.mxu1 %vm1282_vm1, %v5223_v47  ;;  %4979 = vmatprep.subr.msk.mxu0 %vm1286_vm0, %v802_v27  ;;  %v571_v27 = vunpack.c.l.bf16 %v175_v17 }
  0x49   :  { %4982 = vmatprep.subr.msk.mxu1 %vm1286_vm0, %v804_v28  ;;  %4980 = vmatpush1.msk.msra.mxu0 %vm1286_vm0, %v801_v29  ;;  %v573_v28 = vunpack.c.l.bf16 %v176_v18  ;;  %v97_v29 = vld [vmem:[#allocation5 + $0x168] sm:$0xff] }
  0x4a   :  { %4983 = vmatpush1.msk.msra.mxu1 %vm1286_vm0, %v803_v30  ;;  %1825 = vmatprep.subr.mxu0 %v724_v33  ;;  %v98_v30 = vld [vmem:[#allocation5 + $0x170] sm:$0xff]  ;;  %v493_v33 = vunpack.c.l.bf16 %v136_v23  ;;  %v416_v37 = vunpack.c.h.bf16 %v97_v29 }
  0x4b   :  { %1896 = vmatprep.subr.mxu1 %v726_v34  ;;  %1826 = vmatpush1.msra.mxu0 %v723_v35  ;;  %v495_v34 = vunpack.c.l.bf16 %v137_v24  ;;  %v58_v35 = vld [vmem:[#allocation5 + $0x30] sm:$0xff]  ;;  %v418_v38 = vunpack.c.h.bf16 %v98_v30  ;;  %v296_v24 = vld [vmem:[#allocation5 + $0x7a0] sm:$0x11] }
  0x4c   :  { %1897 = vmatpush1.msra.mxu1 %v725_v36  ;;  %1827 = vmatprep.subr.mxu0 %v646_v39  ;;  %v59_v36 = vld [vmem:[#allocation5 + $0x38] sm:$0xff]  ;;  %v415_v39 = vunpack.c.l.bf16 %v97_v29  ;;  %v337_v43 = vunpack.c.l.bf16 %v58_v35  ;;  %v814_v29 = vunpack.c.h.bf16 %v296_v24 }
  0x4d   :  { %1898 = vmatprep.subr.mxu1 %v648_v40  ;;  %1828 = vmatpush1.msra.mxu0 %v645_v41  ;;  %v417_v40 = vunpack.c.l.bf16 %v98_v30  ;;  %v338_v41 = vunpack.c.h.bf16 %v58_v35 }
  0x4e   :  { %1899 = vmatpush1.msra.mxu1 %v647_v42  ;;  %1829 = vmatprep.subr.mxu0 %v568_v45  ;;  %v340_v42 = vunpack.c.h.bf16 %v59_v36  ;;  %v295_v45 = vld [vmem:[#allocation5 + $0x798] sm:$0x11] }
  0x4f   :  { %1900 = vmatprep.subr.mxu1 %v570_v46  ;;  %1830 = vmatpush1.msra.mxu0 %v567_v48  ;;  %v339_v46 = vunpack.c.l.bf16 %v59_v36  ;;  %v255_v48 = vld [vmem:[#allocation5 + $0x658] sm:$0xff]  ;;  %v812_v51 = vunpack.c.h.bf16 %v295_v45 }
  0x50   :  { %1901 = vmatpush1.msra.mxu1 %v569_v49  ;;  %1831 = vmatprep.subr.mxu0 %v490_v52  ;;  %v256_v49 = vld [vmem:[#allocation5 + $0x660] sm:$0xff]  ;;  %v809_v52 = vunpack.c.l.bf16 %v294_v44  ;;  %v732_v56 = vunpack.c.h.bf16 %v255_v48 }
  0x51   :  { %1902 = vmatprep.subr.mxu1 %v492_v53  ;;  %1832 = vmatpush1.msra.mxu0 %v489_v54  ;;  %v811_v53 = vunpack.c.l.bf16 %v295_v45  ;;  %v216_v54 = vld [vmem:[#allocation5 + $0x520] sm:$0xff]  ;;  %v734_v57 = vunpack.c.h.bf16 %v256_v49 }
  0x52   :  { %1903 = vmatpush1.msra.mxu1 %v491_v55  ;;  %1833 = vmatprep.subr.mxu0 %v412_v58  ;;  %v217_v55 = vld [vmem:[#allocation5 + $0x528] sm:$0xff]  ;;  %v731_v58 = vunpack.c.l.bf16 %v255_v48  ;;  %v140_v45 = vld [vmem:[#allocation5 + $0x2c0] sm:$0xff] }
  0x53   :  { %1904 = vmatprep.subr.mxu1 %v414_v59  ;;  %1834 = vmatpush1.msra.mxu0 %v411_v60  ;;  %v733_v59 = vunpack.c.l.bf16 %v256_v49  ;;  %v177_v60 = vld [vmem:[#allocation5 + $0x3e8] sm:$0xff]  ;;  %v655_v2 = vunpack.c.l.bf16 %v217_v55 }
  0x54   :  { %1905 = vmatpush1.msra.mxu1 %v413_v61  ;;  %1835 = vmatprep.subr.mxu0 %v334_v62  ;;  %v178_v61 = vld [vmem:[#allocation5 + $0x3f0] sm:$0xff]  ;;  %v654_v62 = vunpack.c.h.bf16 %v216_v54  ;;  %v576_v5 = vunpack.c.h.bf16 %v177_v60 }
  0x55   :  { %1906 = vmatprep.subr.mxu1 %v336_v63  ;;  %1836 = vmatpush1.msra.mxu0 %v333_v1  ;;  %v656_v63 = vunpack.c.h.bf16 %v217_v55  ;;  %v653_v1 = vunpack.c.l.bf16 %v216_v54  ;;  %v578_v6 = vunpack.c.h.bf16 %v178_v61  ;;  %v502_v54 = vunpack.c.h.bf16 %v140_v45 }
  0x56   :  { %1869 = vmatprep.mubr.f32.mxu0 %v5185_v0  ;;  %1907 = vmatpush1.msra.mxu1 %v335_v4  ;;  %v139_v4 = vld [vmem:[#allocation5 + $0x2b8] sm:$0xff] }
  0x57   :  { %1940 = vmatprep.mubr.f32.mxu1 %v5185_v0  ;;  %4981 = vmatmul.mubr.msk.f32.vlgmr.msra.gmra.mxu0 %vm1282_vm1, %v5223_v47  ;;  %v500_v12 = vunpack.c.h.bf16 %v139_v4 }
  0x58   :  { %4984 = vmatmul.mubr.msk.f32.vlgmr.msra.gmra.mxu1 %vm1282_vm1, %v5223_v47  ;;  %4985 = vmatprep.subr.msk.mxu0 %vm1286_vm0, %v806_v7  ;;  %v575_v7 = vunpack.c.l.bf16 %v177_v60 }
  0x59   :  { %4988 = vmatprep.subr.msk.mxu1 %vm1286_vm0, %v808_v8  ;;  %4986 = vmatpush1.msk.msra.mxu0 %vm1286_vm0, %v805_v9  ;;  %v577_v8 = vunpack.c.l.bf16 %v178_v61  ;;  %v99_v9 = vld [vmem:[#allocation5 + $0x178] sm:$0xff] }
  0x5a   :  { %4989 = vmatpush1.msk.msra.mxu1 %vm1286_vm0, %v807_v10  ;;  %1967 = vmatprep.subr.mxu0 %v728_v13  ;;  %v100_v10 = vld [vmem:[#allocation5 + $0x180] sm:$0xff]  ;;  %v497_v13 = vunpack.c.l.bf16 %v138_v3  ;;  %v420_v17 = vunpack.c.h.bf16 %v99_v9 }
  0x5b   :  { %2038 = vmatprep.subr.mxu1 %v730_v14  ;;  %1968 = vmatpush1.msra.mxu0 %v727_v15  ;;  %v499_v14 = vunpack.c.l.bf16 %v139_v4  ;;  %v60_v15 = vld [vmem:[#allocation5 + $0x40] sm:$0xff]  ;;  %v422_v18 = vunpack.c.h.bf16 %v100_v10  ;;  %v298_v4 = vld [vmem:[#allocation5 + $0x7b0] sm:$0x11] }
  0x5c   :  { %2039 = vmatpush1.msra.mxu1 %v729_v16  ;;  %1969 = vmatprep.subr.mxu0 %v650_v19  ;;  %v61_v16 = vld [vmem:[#allocation5 + $0x48] sm:$0xff]  ;;  %v419_v19 = vunpack.c.l.bf16 %v99_v9  ;;  %v341_v23 = vunpack.c.l.bf16 %v60_v15  ;;  %v818_v9 = vunpack.c.h.bf16 %v298_v4 }
  0x5d   :  { %2040 = vmatprep.subr.mxu1 %v652_v20  ;;  %1970 = vmatpush1.msra.mxu0 %v649_v21  ;;  %v421_v20 = vunpack.c.l.bf16 %v100_v10  ;;  %v342_v21 = vunpack.c.h.bf16 %v60_v15 }
  0x5e   :  { %2041 = vmatpush1.msra.mxu1 %v651_v22  ;;  %1971 = vmatprep.subr.mxu0 %v572_v25  ;;  %v344_v22 = vunpack.c.h.bf16 %v61_v16  ;;  %v297_v25 = vld [vmem:[#allocation5 + $0x7a8] sm:$0x11] }
  0x5f   :  { %2042 = vmatprep.subr.mxu1 %v574_v26  ;;  %1972 = vmatpush1.msra.mxu0 %v571_v27  ;;  %v343_v26 = vunpack.c.l.bf16 %v61_v16  ;;  %v257_v27 = vld [vmem:[#allocation5 + $0x668] sm:$0xff]  ;;  %v816_v30 = vunpack.c.h.bf16 %v297_v25 }
  0x60   :  { %2043 = vmatpush1.msra.mxu1 %v573_v28  ;;  %1973 = vmatprep.subr.mxu0 %v494_v31  ;;  %v258_v28 = vld [vmem:[#allocation5 + $0x670] sm:$0xff]  ;;  %v813_v31 = vunpack.c.l.bf16 %v296_v24  ;;  %v736_v35 = vunpack.c.h.bf16 %v257_v27 }
  0x61   :  { %2044 = vmatprep.subr.mxu1 %v496_v32  ;;  %1974 = vmatpush1.msra.mxu0 %v493_v33  ;;  %v815_v32 = vunpack.c.l.bf16 %v297_v25  ;;  %v218_v33 = vld [vmem:[#allocation5 + $0x530] sm:$0xff]  ;;  %v738_v36 = vunpack.c.h.bf16 %v258_v28 }
  0x62   :  { %2045 = vmatpush1.msra.mxu1 %v495_v34  ;;  %1975 = vmatprep.subr.mxu0 %v416_v37  ;;  %v219_v34 = vld [vmem:[#allocation5 + $0x538] sm:$0xff]  ;;  %v735_v37 = vunpack.c.l.bf16 %v257_v27  ;;  %v142_v25 = vld [vmem:[#allocation5 + $0x2d0] sm:$0xff] }
  0x63   :  { %2046 = vmatprep.subr.mxu1 %v418_v38  ;;  %1976 = vmatpush1.msra.mxu0 %v415_v39  ;;  %v737_v38 = vunpack.c.l.bf16 %v258_v28  ;;  %v179_v39 = vld [vmem:[#allocation5 + $0x3f8] sm:$0xff]  ;;  %v659_v44 = vunpack.c.l.bf16 %v219_v34 }
  0x64   :  { %2047 = vmatpush1.msra.mxu1 %v417_v40  ;;  %1977 = vmatprep.subr.mxu0 %v338_v41  ;;  %v180_v40 = vld [vmem:[#allocation5 + $0x400] sm:$0xff]  ;;  %v658_v41 = vunpack.c.h.bf16 %v218_v33  ;;  %v580_v48 = vunpack.c.h.bf16 %v179_v39 }
  0x65   :  { %2048 = vmatprep.subr.mxu1 %v340_v42  ;;  %1978 = vmatpush1.msra.mxu0 %v337_v43  ;;  %v660_v42 = vunpack.c.h.bf16 %v219_v34  ;;  %v657_v43 = vunpack.c.l.bf16 %v218_v33  ;;  %v582_v49 = vunpack.c.h.bf16 %v180_v40  ;;  %v506_v33 = vunpack.c.h.bf16 %v142_v25 }
  0x66   :  { %2011 = vmatprep.mubr.f32.mxu0 %v5185_v0  ;;  %2049 = vmatpush1.msra.mxu1 %v339_v46  ;;  %v141_v46 = vld [vmem:[#allocation5 + $0x2c8] sm:$0xff] }
  0x67   :  { %2082 = vmatprep.mubr.f32.mxu1 %v5185_v0  ;;  %4987 = vmatmul.mubr.msk.f32.vlgmr.msra.gmra.mxu0 %vm1282_vm1, %v5223_v47  ;;  %v504_v55 = vunpack.c.h.bf16 %v141_v46 }
  0x68   :  { %4990 = vmatmul.mubr.msk.f32.vlgmr.msra.gmra.mxu1 %vm1282_vm1, %v5223_v47  ;;  %4991 = vmatprep.subr.msk.mxu0 %vm1286_vm0, %v810_v50  ;;  %v579_v50 = vunpack.c.l.bf16 %v179_v39 }
  0x69   :  { %4994 = vmatprep.subr.msk.mxu1 %vm1286_vm0, %v812_v51  ;;  %4992 = vmatpush1.msk.msra.mxu0 %vm1286_vm0, %v809_v52  ;;  %v581_v51 = vunpack.c.l.bf16 %v180_v40  ;;  %v101_v52 = vld [vmem:[#allocation5 + $0x188] sm:$0xff] }
  0x6a   :  { %4995 = vmatpush1.msk.msra.mxu1 %vm1286_vm0, %v811_v53  ;;  %2109 = vmatprep.subr.mxu0 %v732_v56  ;;  %v102_v53 = vld [vmem:[#allocation5 + $0x190] sm:$0xff]  ;;  %v501_v56 = vunpack.c.l.bf16 %v140_v45  ;;  %v424_v60 = vunpack.c.h.bf16 %v101_v52 }
  0x6b   :  { %2180 = vmatprep.subr.mxu1 %v734_v57  ;;  %2110 = vmatpush1.msra.mxu0 %v731_v58  ;;  %v503_v57 = vunpack.c.l.bf16 %v141_v46  ;;  %v62_v58 = vld [vmem:[#allocation5 + $0x50] sm:$0xff]  ;;  %v426_v61 = vunpack.c.h.bf16 %v102_v53  ;;  %v300_v46 = vld [vmem:[#allocation5 + $0x7c0] sm:$0x11] }
  0x6c   :  { %2181 = vmatpush1.msra.mxu1 %v733_v59  ;;  %2111 = vmatprep.subr.mxu0 %v654_v62  ;;  %v63_v59 = vld [vmem:[#allocation5 + $0x58] sm:$0xff]  ;;  %v423_v62 = vunpack.c.l.bf16 %v101_v52  ;;  %v345_v3 = vunpack.c.l.bf16 %v62_v58  ;;  %v822_v52 = vunpack.c.h.bf16 %v300_v46 }
  0x6d   :  { %2182 = vmatprep.subr.mxu1 %v656_v63  ;;  %2112 = vmatpush1.msra.mxu0 %v653_v1  ;;  %v425_v63 = vunpack.c.l.bf16 %v102_v53  ;;  %v346_v1 = vunpack.c.h.bf16 %v62_v58 }
  0x6e   :  { %2183 = vmatpush1.msra.mxu1 %v655_v2  ;;  %2113 = vmatprep.subr.mxu0 %v576_v5  ;;  %v348_v2 = vunpack.c.h.bf16 %v63_v59  ;;  %v299_v5 = vld [vmem:[#allocation5 + $0x7b8] sm:$0x11] }
  0x6f   :  { %2184 = vmatprep.subr.mxu1 %v578_v6  ;;  %2114 = vmatpush1.msra.mxu0 %v575_v7  ;;  %v347_v6 = vunpack.c.l.bf16 %v63_v59  ;;  %v259_v7 = vld [vmem:[#allocation5 + $0x678] sm:$0xff]  ;;  %v820_v10 = vunpack.c.h.bf16 %v299_v5 }
  0x70   :  { %2185 = vmatpush1.msra.mxu1 %v577_v8  ;;  %2115 = vmatprep.subr.mxu0 %v498_v11  ;;  %v260_v8 = vld [vmem:[#allocation5 + $0x680] sm:$0xff]  ;;  %v817_v11 = vunpack.c.l.bf16 %v298_v4  ;;  %v740_v15 = vunpack.c.h.bf16 %v259_v7 }
  0x71   :  { %2186 = vmatprep.subr.mxu1 %v500_v12  ;;  %2116 = vmatpush1.msra.mxu0 %v497_v13  ;;  %v819_v12 = vunpack.c.l.bf16 %v299_v5  ;;  %v220_v13 = vld [vmem:[#allocation5 + $0x540] sm:$0xff]  ;;  %v742_v16 = vunpack.c.h.bf16 %v260_v8 }
  0x72   :  { %2187 = vmatpush1.msra.mxu1 %v499_v14  ;;  %2117 = vmatprep.subr.mxu0 %v420_v17  ;;  %v221_v14 = vld [vmem:[#allocation5 + $0x548] sm:$0xff]  ;;  %v739_v17 = vunpack.c.l.bf16 %v259_v7  ;;  %v144_v5 = vld [vmem:[#allocation5 + $0x2e0] sm:$0xff] }
  0x73   :  { %2188 = vmatprep.subr.mxu1 %v422_v18  ;;  %2118 = vmatpush1.msra.mxu0 %v419_v19  ;;  %v741_v18 = vunpack.c.l.bf16 %v260_v8  ;;  %v181_v19 = vld [vmem:[#allocation5 + $0x408] sm:$0xff]  ;;  %v663_v24 = vunpack.c.l.bf16 %v221_v14 }
  0x74   :  { %2189 = vmatpush1.msra.mxu1 %v421_v20  ;;  %2119 = vmatprep.subr.mxu0 %v342_v21  ;;  %v182_v20 = vld [vmem:[#allocation5 + $0x410] sm:$0xff]  ;;  %v662_v21 = vunpack.c.h.bf16 %v220_v13  ;;  %v584_v27 = vunpack.c.h.bf16 %v181_v19 }
  0x75   :  { %2190 = vmatprep.subr.mxu1 %v344_v22  ;;  %2120 = vmatpush1.msra.mxu0 %v341_v23  ;;  %v664_v22 = vunpack.c.h.bf16 %v221_v14  ;;  %v661_v23 = vunpack.c.l.bf16 %v220_v13  ;;  %v586_v28 = vunpack.c.h.bf16 %v182_v20  ;;  %v509_v14 = vunpack.c.l.bf16 %v144_v5 }
  0x76   :  { %2153 = vmatprep.mubr.f32.mxu0 %v5185_v0  ;;  %2191 = vmatpush1.msra.mxu1 %v343_v26  ;;  %v143_v26 = vld [vmem:[#allocation5 + $0x2d8] sm:$0xff] }
  0x77   :  { %2224 = vmatprep.mubr.f32.mxu1 %v5185_v0  ;;  %4993 = vmatmul.mubr.msk.f32.vlgmr.msra.gmra.mxu0 %vm1282_vm1, %v5223_v47  ;;  %v508_v34 = vunpack.c.h.bf16 %v143_v26 }
  0x78   :  { %4996 = vmatmul.mubr.msk.f32.vlgmr.msra.gmra.mxu1 %vm1282_vm1, %v5223_v47  ;;  %4997 = vmatprep.subr.msk.mxu0 %vm1286_vm0, %v814_v29  ;;  %v583_v29 = vunpack.c.l.bf16 %v181_v19 }
  0x79   :  { %5000 = vmatprep.subr.msk.mxu1 %vm1286_vm0, %v816_v30  ;;  %4998 = vmatpush1.msk.msra.mxu0 %vm1286_vm0, %v813_v31  ;;  %v585_v30 = vunpack.c.l.bf16 %v182_v20  ;;  %v103_v31 = vld [vmem:[#allocation5 + $0x198] sm:$0xff] }
  0x7a   :  { %5001 = vmatpush1.msk.msra.mxu1 %vm1286_vm0, %v815_v32  ;;  %2251 = vmatprep.subr.mxu0 %v736_v35  ;;  %v104_v32 = vld [vmem:[#allocation5 + $0x1a0] sm:$0xff]  ;;  %v505_v35 = vunpack.c.l.bf16 %v142_v25  ;;  %v428_v39 = vunpack.c.h.bf16 %v103_v31  ;;  %v302_v25 = vld [vmem:[#allocation5 + $0x7d0] sm:$0x11] }
  0x7b   :  { %2322 = vmatprep.subr.mxu1 %v738_v36  ;;  %2252 = vmatpush1.msra.mxu0 %v735_v37  ;;  %v507_v36 = vunpack.c.l.bf16 %v143_v26  ;;  %v64_v37 = vld [vmem:[#allocation5 + $0x60] sm:$0xff]  ;;  %v430_v40 = vunpack.c.h.bf16 %v104_v32  ;;  %v303_v26 = vld [vmem:[#allocation5 + $0x7d8] sm:$0x11] }
  0x7c   :  { %2323 = vmatpush1.msra.mxu1 %v737_v38  ;;  %2253 = vmatprep.subr.mxu0 %v658_v41  ;;  %v65_v38 = vld [vmem:[#allocation5 + $0x68] sm:$0xff]  ;;  %v427_v41 = vunpack.c.l.bf16 %v103_v31  ;;  %v349_v45 = vunpack.c.l.bf16 %v64_v37  ;;  %v828_v31 = vunpack.c.h.bf16 %v303_v26 }
  0x7d   :  { %2324 = vmatprep.subr.mxu1 %v660_v42  ;;  %2254 = vmatpush1.msra.mxu0 %v657_v43  ;;  %v429_v42 = vunpack.c.l.bf16 %v104_v32  ;;  %v350_v43 = vunpack.c.h.bf16 %v64_v37  ;;  %v825_v32 = vunpack.c.l.bf16 %v302_v25 }
  0x7e   :  { %2325 = vmatpush1.msra.mxu1 %v659_v44  ;;  %2255 = vmatprep.subr.mxu0 %v580_v48  ;;  %v352_v44 = vunpack.c.h.bf16 %v65_v38  ;;  %v301_v48 = vld [vmem:[#allocation5 + $0x7c8] sm:$0x11] }
  0x7f   :  { %2326 = vmatprep.subr.mxu1 %v582_v49  ;;  %2256 = vmatpush1.msra.mxu0 %v579_v50  ;;  %v351_v49 = vunpack.c.l.bf16 %v65_v38  ;;  %v261_v50 = vld [vmem:[#allocation5 + $0x688] sm:$0xff]  ;;  %v824_v53 = vunpack.c.h.bf16 %v301_v48  ;;  %v5295_v38 = vld [vmem:[#allocation2] sm:$0x1] }
  0x80   :  { %2327 = vmatpush1.msra.mxu1 %v581_v51  ;;  %2257 = vmatprep.subr.mxu0 %v502_v54  ;;  %v262_v51 = vld [vmem:[#allocation5 + $0x690] sm:$0xff]  ;;  %v821_v54 = vunpack.c.l.bf16 %v300_v46  ;;  %v744_v58 = vunpack.c.h.bf16 %v261_v50 }
  0x81   :  { %2328 = vmatprep.subr.mxu1 %v504_v55  ;;  %2258 = vmatpush1.msra.mxu0 %v501_v56  ;;  %v823_v55 = vunpack.c.l.bf16 %v301_v48  ;;  %v222_v56 = vld [vmem:[#allocation5 + $0x550] sm:$0xff]  ;;  %v746_v59 = vunpack.c.h.bf16 %v262_v51 }
  0x82   :  { %2329 = vmatpush1.msra.mxu1 %v503_v57  ;;  %2259 = vmatprep.subr.mxu0 %v424_v60  ;;  %v223_v57 = vld [vmem:[#allocation5 + $0x558] sm:$0xff]  ;;  %v743_v60 = vunpack.c.l.bf16 %v261_v50  ;;  %v146_v48 = vld [vmem:[#allocation5 + $0x2f0] sm:$0xff] }
  0x83   :  { %2330 = vmatprep.subr.mxu1 %v426_v61  ;;  %2260 = vmatpush1.msra.mxu0 %v423_v62  ;;  %v745_v61 = vunpack.c.l.bf16 %v262_v51  ;;  %v183_v62 = vld [vmem:[#allocation5 + $0x418] sm:$0xff]  ;;  %v667_v4 = vunpack.c.l.bf16 %v223_v57 }
  0x84   :  { %2331 = vmatpush1.msra.mxu1 %v425_v63  ;;  %2261 = vmatprep.subr.mxu0 %v346_v1  ;;  %v184_v63 = vld [vmem:[#allocation5 + $0x420] sm:$0xff]  ;;  %v666_v1 = vunpack.c.h.bf16 %v222_v56  ;;  %v587_v8 = vunpack.c.l.bf16 %v183_v62 }
  0x85   :  { %2332 = vmatprep.subr.mxu1 %v348_v2  ;;  %2262 = vmatpush1.msra.mxu0 %v345_v3  ;;  %v668_v2 = vunpack.c.h.bf16 %v223_v57  ;;  %v665_v3 = vunpack.c.l.bf16 %v222_v56  ;;  %v590_v7 = vunpack.c.h.bf16 %v184_v63  ;;  %v514_v56 = vunpack.c.h.bf16 %v146_v48 }
  0x86   :  { %2295 = vmatprep.mubr.f32.mxu0 %v5185_v0  ;;  %2333 = vmatpush1.msra.mxu1 %v347_v6  ;;  %v145_v6 = vld [vmem:[#allocation5 + $0x2e8] sm:$0xff] }
  0x87   :  { %2366 = vmatprep.mubr.f32.mxu1 %v5185_v0  ;;  %4999 = vmatmul.mubr.msk.f32.vlgmr.msra.gmra.mxu0 %vm1282_vm1, %v5223_v47  ;;  %v512_v13 = vunpack.c.h.bf16 %v145_v6 }
  0x88   :  { %5002 = vmatmul.mubr.msk.f32.vlgmr.msra.gmra.mxu1 %vm1282_vm1, %v5223_v47  ;;  %5003 = vmatprep.subr.msk.mxu0 %vm1286_vm0, %v818_v9  ;;  %v589_v9 = vunpack.c.l.bf16 %v184_v63 }
  0x89   :  { %5006 = vmatprep.subr.msk.mxu1 %vm1286_vm0, %v820_v10  ;;  %5004 = vmatpush1.msk.msra.mxu0 %vm1286_vm0, %v817_v11  ;;  %v105_v10 = vld [vmem:[#allocation5 + $0x1a8] sm:$0xff]  ;;  %v106_v11 = vld [vmem:[#allocation5 + $0x1b0] sm:$0xff] }
  0x8a   :  { %5007 = vmatpush1.msk.msra.mxu1 %vm1286_vm0, %v819_v12  ;;  %2393 = vmatprep.subr.mxu0 %v740_v15  ;;  %v510_v12 = vunpack.c.h.bf16 %v144_v5  ;;  %v511_v15 = vunpack.c.l.bf16 %v145_v6  ;;  %v434_v19 = vunpack.c.h.bf16 %v106_v11  ;;  %v431_v20 = vunpack.c.l.bf16 %v105_v10  ;;  %v304_v6 = vld [vmem:[#allocation5 + $0x7e0] sm:$0x11] }
  0x8b   :  { %2464 = vmatprep.subr.mxu1 %v742_v16  ;;  %2394 = vmatpush1.msra.mxu0 %v739_v17  ;;  %v66_v16 = vld [vmem:[#allocation5 + $0x70] sm:$0xff]  ;;  %v67_v17 = vld [vmem:[#allocation5 + $0x78] sm:$0xff] }
  0x8c   :  { %2465 = vmatpush1.msra.mxu1 %v741_v18  ;;  %2395 = vmatprep.subr.mxu0 %v662_v21  ;;  %v432_v18 = vunpack.c.h.bf16 %v105_v10  ;;  %v433_v21 = vunpack.c.l.bf16 %v106_v11  ;;  %v830_v10 = vunpack.c.h.bf16 %v304_v6 }
  0x8d   :  { %2466 = vmatprep.subr.mxu1 %v664_v22  ;;  %2396 = vmatpush1.msra.mxu0 %v661_v23  ;;  %v354_v22 = vunpack.c.h.bf16 %v66_v16  ;;  %v356_v23 = vunpack.c.h.bf16 %v67_v17 }
  0x8e   :  { %2467 = vmatpush1.msra.mxu1 %v663_v24  ;;  %2397 = vmatprep.subr.mxu0 %v584_v27  ;;  %v353_v24 = vunpack.c.l.bf16 %v66_v16  ;;  %v355_v27 = vunpack.c.l.bf16 %v67_v17 }
  0x8f   :  { %2468 = vmatprep.subr.mxu1 %v586_v28  ;;  %2398 = vmatpush1.msra.mxu0 %v583_v29  ;;  %v263_v28 = vld [vmem:[#allocation5 + $0x698] sm:$0xff]  ;;  %v264_v29 = vld [vmem:[#allocation5 + $0x6a0] sm:$0xff] }
  0x90   :  { %2469 = vmatpush1.msra.mxu1 %v585_v30  ;;  %2399 = vmatprep.subr.mxu0 %v506_v33  ;;  %v826_v30 = vunpack.c.h.bf16 %v302_v25  ;;  %v827_v33 = vunpack.c.l.bf16 %v303_v26  ;;  %v750_v37 = vunpack.c.h.bf16 %v264_v29  ;;  %v148_v26 = vld [vmem:[#allocation5 + $0x300] sm:$0xff] }
  0x91   :  { %2470 = vmatprep.subr.mxu1 %v508_v34  ;;  %2400 = vmatpush1.msra.mxu0 %v505_v35  ;;  %v224_v34 = vld [vmem:[#allocation5 + $0x560] sm:$0xff]  ;;  %v225_v35 = vld [vmem:[#allocation5 + $0x568] sm:$0xff] }
  0x92   :  { %2471 = vmatpush1.msra.mxu1 %v507_v36  ;;  %2401 = vmatprep.subr.mxu0 %v428_v39  ;;  %v748_v36 = vunpack.c.h.bf16 %v263_v28  ;;  %v747_v39 = vunpack.c.l.bf16 %v263_v28  ;;  %v671_v46 = vunpack.c.l.bf16 %v225_v35 }
  0x93   :  { %2472 = vmatprep.subr.mxu1 %v430_v40  ;;  %2402 = vmatpush1.msra.mxu0 %v427_v41  ;;  %v749_v40 = vunpack.c.l.bf16 %v264_v29  ;;  %v185_v41 = vld [vmem:[#allocation5 + $0x428] sm:$0xff] }
  0x94   :  { %2473 = vmatpush1.msra.mxu1 %v429_v42  ;;  %2403 = vmatprep.subr.mxu0 %v350_v43  ;;  %v186_v42 = vld [vmem:[#allocation5 + $0x430] sm:$0xff]  ;;  %v670_v43 = vunpack.c.h.bf16 %v224_v34  ;;  %v592_v50 = vunpack.c.h.bf16 %v185_v41 }
  0x95   :  { %2474 = vmatprep.subr.mxu1 %v352_v44  ;;  %2404 = vmatpush1.msra.mxu0 %v349_v45  ;;  %v672_v44 = vunpack.c.h.bf16 %v225_v35  ;;  %v669_v45 = vunpack.c.l.bf16 %v224_v34  ;;  %v594_v51 = vunpack.c.h.bf16 %v186_v42  ;;  %v518_v34 = vunpack.c.h.bf16 %v148_v26 }
  0x96   :  { %2437 = vmatprep.mubr.f32.mxu0 %v5185_v0  ;;  %2475 = vmatpush1.msra.mxu1 %v351_v49  ;;  %v147_v49 = vld [vmem:[#allocation5 + $0x2f8] sm:$0xff] }
  0x97   :  { %2508 = vmatprep.mubr.f32.mxu1 %v5185_v0  ;;  %5005 = vmatmul.mubr.msk.f32.vlgmr.msra.gmra.mxu0 %vm1282_vm1, %v5223_v47  ;;  %v516_v57 = vunpack.c.h.bf16 %v147_v49 }
  0x98   :  { %5008 = vmatmul.mubr.msk.f32.vlgmr.msra.gmra.mxu1 %vm1282_vm1, %v5223_v47  ;;  %5009 = vmatprep.subr.msk.mxu0 %vm1286_vm0, %v822_v52  ;;  %v588_v47 = vunpack.c.h.bf16 %v183_v62  ;;  %v591_v52 = vunpack.c.l.bf16 %v185_v41 }
  0x99   :  { %5012 = vmatprep.subr.msk.mxu1 %vm1286_vm0, %v824_v53  ;;  %5010 = vmatpush1.msk.msra.mxu0 %vm1286_vm0, %v821_v54  ;;  %v593_v53 = vunpack.c.l.bf16 %v186_v42  ;;  %v107_v54 = vld [vmem:[#allocation5 + $0x1b8] sm:$0xff] }
  0x9a   :  { %5013 = vmatpush1.msk.msra.mxu1 %vm1286_vm0, %v823_v55  ;;  %2535 = vmatprep.subr.mxu0 %v744_v58  ;;  %v108_v55 = vld [vmem:[#allocation5 + $0x1c0] sm:$0xff]  ;;  %v513_v58 = vunpack.c.l.bf16 %v146_v48  ;;  %v436_v62 = vunpack.c.h.bf16 %v107_v54 }
  0x9b   :  { %2606 = vmatprep.subr.mxu1 %v746_v59  ;;  %2536 = vmatpush1.msra.mxu0 %v743_v60  ;;  %v515_v59 = vunpack.c.l.bf16 %v147_v49  ;;  %v68_v60 = vld [vmem:[#allocation5 + $0x80] sm:$0xff]  ;;  %v438_v63 = vunpack.c.h.bf16 %v108_v55  ;;  %v306_v49 = vld [vmem:[#allocation5 + $0x7f0] sm:$0x11] }
  0x9c   :  { %2607 = vmatpush1.msra.mxu1 %v745_v61  ;;  %2537 = vmatprep.subr.mxu0 %v666_v1  ;;  %v69_v61 = vld [vmem:[#allocation5 + $0x88] sm:$0xff]  ;;  %v435_v1 = vunpack.c.l.bf16 %v107_v54  ;;  %v357_v5 = vunpack.c.l.bf16 %v68_v60  ;;  %v834_v54 = vunpack.c.h.bf16 %v306_v49 }
  0x9d   :  { %2608 = vmatprep.subr.mxu1 %v668_v2  ;;  %2538 = vmatpush1.msra.mxu0 %v665_v3  ;;  %v437_v2 = vunpack.c.l.bf16 %v108_v55  ;;  %v358_v3 = vunpack.c.h.bf16 %v68_v60 }
  0x9e   :  { %2609 = vmatpush1.msra.mxu1 %v667_v4  ;;  %2539 = vmatprep.subr.mxu0 %v588_v47  ;;  %v360_v4 = vunpack.c.h.bf16 %v69_v61  ;;  %v305_v47 = vld [vmem:[#allocation5 + $0x7e8] sm:$0x11] }
  0x9f   :  { %2610 = vmatprep.subr.mxu1 %v590_v7  ;;  %2540 = vmatpush1.msra.mxu0 %v587_v8  ;;  %v359_v7 = vunpack.c.l.bf16 %v69_v61  ;;  %v265_v8 = vld [vmem:[#allocation5 + $0x6a8] sm:$0xff]  ;;  %v832_v11 = vunpack.c.h.bf16 %v305_v47 }
  0xa0   :  { %2611 = vmatpush1.msra.mxu1 %v589_v9  ;;  %2541 = vmatprep.subr.mxu0 %v510_v12  ;;  %v266_v9 = vld [vmem:[#allocation5 + $0x6b0] sm:$0xff]  ;;  %v829_v12 = vunpack.c.l.bf16 %v304_v6  ;;  %v752_v16 = vunpack.c.h.bf16 %v265_v8 }
  0xa1   :  { %2612 = vmatprep.subr.mxu1 %v512_v13  ;;  %2542 = vmatpush1.msra.mxu0 %v509_v14  ;;  %v831_v13 = vunpack.c.l.bf16 %v305_v47  ;;  %v226_v14 = vld [vmem:[#allocation5 + $0x570] sm:$0xff]  ;;  %v754_v17 = vunpack.c.h.bf16 %v266_v9 }
  0xa2   :  { %2613 = vmatpush1.msra.mxu1 %v511_v15  ;;  %2543 = vmatprep.subr.mxu0 %v432_v18  ;;  %v227_v15 = vld [vmem:[#allocation5 + $0x578] sm:$0xff]  ;;  %v751_v18 = vunpack.c.l.bf16 %v265_v8  ;;  %v150_v47 = vld [vmem:[#allocation5 + $0x310] sm:$0xff] }
  0xa3   :  { %2614 = vmatprep.subr.mxu1 %v434_v19  ;;  %2544 = vmatpush1.msra.mxu0 %v431_v20  ;;  %v753_v19 = vunpack.c.l.bf16 %v266_v9  ;;  %v187_v20 = vld [vmem:[#allocation5 + $0x438] sm:$0xff]  ;;  %v675_v25 = vunpack.c.l.bf16 %v227_v15 }
  0xa4   :  { %2615 = vmatpush1.msra.mxu1 %v433_v21  ;;  %2545 = vmatprep.subr.mxu0 %v354_v22  ;;  %v188_v21 = vld [vmem:[#allocation5 + $0x440] sm:$0xff]  ;;  %v674_v22 = vunpack.c.h.bf16 %v226_v14  ;;  %v596_v28 = vunpack.c.h.bf16 %v187_v20 }
  0xa5   :  { %2616 = vmatprep.subr.mxu1 %v356_v23  ;;  %2546 = vmatpush1.msra.mxu0 %v353_v24  ;;  %v676_v23 = vunpack.c.h.bf16 %v227_v15  ;;  %v673_v24 = vunpack.c.l.bf16 %v226_v14  ;;  %v598_v29 = vunpack.c.h.bf16 %v188_v21  ;;  %v522_v14 = vunpack.c.h.bf16 %v150_v47 }
  0xa6   :  { %2579 = vmatprep.mubr.f32.mxu0 %v5185_v0  ;;  %2617 = vmatpush1.msra.mxu1 %v355_v27  ;;  %v149_v27 = vld [vmem:[#allocation5 + $0x308] sm:$0xff] }
  0xa7   :  { %2650 = vmatprep.mubr.f32.mxu1 %v5185_v0  ;;  %5011 = vmatmul.mubr.msk.f32.vlgmr.msra.gmra.mxu0 %vm1282_vm1, %v5295_v38  ;;  %v520_v35 = vunpack.c.h.bf16 %v149_v27 }
  0xa8   :  { %5014 = vmatmul.mubr.msk.f32.vlgmr.msra.gmra.mxu1 %vm1282_vm1, %v5295_v38  ;;  %5015 = vmatprep.subr.msk.mxu0 %vm1286_vm0, %v826_v30  ;;  %v595_v30 = vunpack.c.l.bf16 %v187_v20 }
  0xa9   :  { %5018 = vmatprep.subr.msk.mxu1 %vm1286_vm0, %v828_v31  ;;  %5016 = vmatpush1.msk.msra.mxu0 %vm1286_vm0, %v825_v32  ;;  %v597_v31 = vunpack.c.l.bf16 %v188_v21  ;;  %v109_v32 = vld [vmem:[#allocation5 + $0x1c8] sm:$0xff] }
  0xaa   :  { %5019 = vmatpush1.msk.msra.mxu1 %vm1286_vm0, %v827_v33  ;;  %2677 = vmatprep.subr.mxu0 %v748_v36  ;;  %v110_v33 = vld [vmem:[#allocation5 + $0x1d0] sm:$0xff]  ;;  %v517_v36 = vunpack.c.l.bf16 %v148_v26  ;;  %v440_v41 = vunpack.c.h.bf16 %v109_v32 }
  0xab   :  { %2748 = vmatprep.subr.mxu1 %v750_v37  ;;  %2678 = vmatpush1.msra.mxu0 %v747_v39  ;;  %v519_v37 = vunpack.c.l.bf16 %v149_v27  ;;  %v70_v39 = vld [vmem:[#allocation5 + $0x90] sm:$0xff]  ;;  %v442_v42 = vunpack.c.h.bf16 %v110_v33  ;;  %v308_v27 = vld [vmem:[#allocation5 + $0x800] sm:$0x11] }
  0xac   :  { %2749 = vmatpush1.msra.mxu1 %v749_v40  ;;  %2679 = vmatprep.subr.mxu0 %v670_v43  ;;  %v71_v40 = vld [vmem:[#allocation5 + $0x98] sm:$0xff]  ;;  %v439_v43 = vunpack.c.l.bf16 %v109_v32  ;;  %v361_v48 = vunpack.c.l.bf16 %v70_v39  ;;  %v838_v32 = vunpack.c.h.bf16 %v308_v27 }
  0xad   :  { %2750 = vmatprep.subr.mxu1 %v672_v44  ;;  %2680 = vmatpush1.msra.mxu0 %v669_v45  ;;  %v441_v44 = vunpack.c.l.bf16 %v110_v33  ;;  %v362_v45 = vunpack.c.h.bf16 %v70_v39 }
  0xae   :  { %2751 = vmatpush1.msra.mxu1 %v671_v46  ;;  %2681 = vmatprep.subr.mxu0 %v592_v50  ;;  %v364_v46 = vunpack.c.h.bf16 %v71_v40  ;;  %v307_v50 = vld [vmem:[#allocation5 + $0x7f8] sm:$0x11] }
  0xaf   :  { %2752 = vmatprep.subr.mxu1 %v594_v51  ;;  %2682 = vmatpush1.msra.mxu0 %v591_v52  ;;  %v363_v51 = vunpack.c.l.bf16 %v71_v40  ;;  %v267_v52 = vld [vmem:[#allocation5 + $0x6b8] sm:$0xff]  ;;  %v836_v55 = vunpack.c.h.bf16 %v307_v50 }
  0xb0   :  { %2753 = vmatpush1.msra.mxu1 %v593_v53  ;;  %2683 = vmatprep.subr.mxu0 %v514_v56  ;;  %v268_v53 = vld [vmem:[#allocation5 + $0x6c0] sm:$0xff]  ;;  %v833_v56 = vunpack.c.l.bf16 %v306_v49  ;;  %v756_v60 = vunpack.c.h.bf16 %v267_v52 }
  0xb1   :  { %2754 = vmatprep.subr.mxu1 %v516_v57  ;;  %2684 = vmatpush1.msra.mxu0 %v513_v58  ;;  %v835_v57 = vunpack.c.l.bf16 %v307_v50  ;;  %v228_v58 = vld [vmem:[#allocation5 + $0x580] sm:$0xff]  ;;  %v758_v61 = vunpack.c.h.bf16 %v268_v53 }
  0xb2   :  { %2755 = vmatpush1.msra.mxu1 %v515_v59  ;;  %2685 = vmatprep.subr.mxu0 %v436_v62  ;;  %v229_v59 = vld [vmem:[#allocation5 + $0x588] sm:$0xff]  ;;  %v755_v62 = vunpack.c.l.bf16 %v267_v52  ;;  %v152_v50 = vld [vmem:[#allocation5 + $0x320] sm:$0xff] }
  0xb3   :  { %2756 = vmatprep.subr.mxu1 %v438_v63  ;;  %2686 = vmatpush1.msra.mxu0 %v435_v1  ;;  %v757_v63 = vunpack.c.l.bf16 %v268_v53  ;;  %v189_v1 = vld [vmem:[#allocation5 + $0x448] sm:$0xff]  ;;  %v679_v6 = vunpack.c.l.bf16 %v229_v59 }
  0xb4   :  { %2757 = vmatpush1.msra.mxu1 %v437_v2  ;;  %2687 = vmatprep.subr.mxu0 %v358_v3  ;;  %v190_v2 = vld [vmem:[#allocation5 + $0x450] sm:$0xff]  ;;  %v678_v3 = vunpack.c.h.bf16 %v228_v58  ;;  %v600_v8 = vunpack.c.h.bf16 %v189_v1 }
  0xb5   :  { %2758 = vmatprep.subr.mxu1 %v360_v4  ;;  %2688 = vmatpush1.msra.mxu0 %v357_v5  ;;  %v680_v4 = vunpack.c.h.bf16 %v229_v59  ;;  %v677_v5 = vunpack.c.l.bf16 %v228_v58  ;;  %v602_v9 = vunpack.c.h.bf16 %v190_v2  ;;  %v526_v58 = vunpack.c.h.bf16 %v152_v50 }
  0xb6   :  { %2721 = vmatprep.mubr.f32.mxu0 %v5185_v0  ;;  %2759 = vmatpush1.msra.mxu1 %v359_v7  ;;  %v151_v7 = vld [vmem:[#allocation5 + $0x318] sm:$0xff] }
  0xb7   :  { %2792 = vmatprep.mubr.f32.mxu1 %v5185_v0  ;;  %5017 = vmatmul.mubr.msk.f32.vlgmr.msra.gmra.mxu0 %vm1282_vm1, %v5295_v38  ;;  %v524_v15 = vunpack.c.h.bf16 %v151_v7 }
  0xb8   :  { %5020 = vmatmul.mubr.msk.f32.vlgmr.msra.gmra.mxu1 %vm1282_vm1, %v5295_v38  ;;  %5021 = vmatprep.subr.msk.mxu0 %vm1286_vm0, %v830_v10  ;;  %v599_v10 = vunpack.c.l.bf16 %v189_v1 }
  0xb9   :  { %5024 = vmatprep.subr.msk.mxu1 %vm1286_vm0, %v832_v11  ;;  %5022 = vmatpush1.msk.msra.mxu0 %vm1286_vm0, %v829_v12  ;;  %v601_v11 = vunpack.c.l.bf16 %v190_v2  ;;  %v111_v12 = vld [vmem:[#allocation5 + $0x1d8] sm:$0xff] }
  0xba   :  { %5025 = vmatpush1.msk.msra.mxu1 %vm1286_vm0, %v831_v13  ;;  %2819 = vmatprep.subr.mxu0 %v752_v16  ;;  %v112_v13 = vld [vmem:[#allocation5 + $0x1e0] sm:$0xff]  ;;  %v521_v16 = vunpack.c.l.bf16 %v150_v47  ;;  %v444_v20 = vunpack.c.h.bf16 %v111_v12 }
  0xbb   :  { %2890 = vmatprep.subr.mxu1 %v754_v17  ;;  %2820 = vmatpush1.msra.mxu0 %v751_v18  ;;  %v523_v17 = vunpack.c.l.bf16 %v151_v7  ;;  %v72_v18 = vld [vmem:[#allocation5 + $0xa0] sm:$0xff]  ;;  %v446_v21 = vunpack.c.h.bf16 %v112_v13  ;;  %v310_v7 = vld [vmem:[#allocation5 + $0x810] sm:$0x11] }
  0xbc   :  { %2891 = vmatpush1.msra.mxu1 %v753_v19  ;;  %2821 = vmatprep.subr.mxu0 %v674_v22  ;;  %v73_v19 = vld [vmem:[#allocation5 + $0xa8] sm:$0xff]  ;;  %v443_v22 = vunpack.c.l.bf16 %v111_v12  ;;  %v365_v26 = vunpack.c.l.bf16 %v72_v18  ;;  %v842_v12 = vunpack.c.h.bf16 %v310_v7 }
  0xbd   :  { %2892 = vmatprep.subr.mxu1 %v676_v23  ;;  %2822 = vmatpush1.msra.mxu0 %v673_v24  ;;  %v445_v23 = vunpack.c.l.bf16 %v112_v13  ;;  %v366_v24 = vunpack.c.h.bf16 %v72_v18 }
  0xbe   :  { %2893 = vmatpush1.msra.mxu1 %v675_v25  ;;  %2823 = vmatprep.subr.mxu0 %v596_v28  ;;  %v368_v25 = vunpack.c.h.bf16 %v73_v19  ;;  %v309_v28 = vld [vmem:[#allocation5 + $0x808] sm:$0x11] }
  0xbf   :  { %2894 = vmatprep.subr.mxu1 %v598_v29  ;;  %2824 = vmatpush1.msra.mxu0 %v595_v30  ;;  %v367_v29 = vunpack.c.l.bf16 %v73_v19  ;;  %v269_v30 = vld [vmem:[#allocation5 + $0x6c8] sm:$0xff]  ;;  %v840_v33 = vunpack.c.h.bf16 %v309_v28 }
  0xc0   :  { %2895 = vmatpush1.msra.mxu1 %v597_v31  ;;  %2825 = vmatprep.subr.mxu0 %v518_v34  ;;  %v270_v31 = vld [vmem:[#allocation5 + $0x6d0] sm:$0xff]  ;;  %v837_v34 = vunpack.c.l.bf16 %v308_v27  ;;  %v760_v39 = vunpack.c.h.bf16 %v269_v30 }
  0xc1   :  { %2896 = vmatprep.subr.mxu1 %v520_v35  ;;  %2826 = vmatpush1.msra.mxu0 %v517_v36  ;;  %v839_v35 = vunpack.c.l.bf16 %v309_v28  ;;  %v230_v36 = vld [vmem:[#allocation5 + $0x590] sm:$0xff]  ;;  %v762_v40 = vunpack.c.h.bf16 %v270_v31 }
  0xc2   :  { %2897 = vmatpush1.msra.mxu1 %v519_v37  ;;  %2827 = vmatprep.subr.mxu0 %v440_v41  ;;  %v231_v37 = vld [vmem:[#allocation5 + $0x598] sm:$0xff]  ;;  %v759_v41 = vunpack.c.l.bf16 %v269_v30  ;;  %v154_v28 = vld [vmem:[#allocation5 + $0x330] sm:$0xff] }
  0xc3   :  { %2898 = vmatprep.subr.mxu1 %v442_v42  ;;  %2828 = vmatpush1.msra.mxu0 %v439_v43  ;;  %v761_v42 = vunpack.c.l.bf16 %v270_v31  ;;  %v191_v43 = vld [vmem:[#allocation5 + $0x458] sm:$0xff]  ;;  %v683_v49 = vunpack.c.l.bf16 %v231_v37 }
  0xc4   :  { %2899 = vmatpush1.msra.mxu1 %v441_v44  ;;  %2829 = vmatprep.subr.mxu0 %v362_v45  ;;  %v192_v44 = vld [vmem:[#allocation5 + $0x460] sm:$0xff]  ;;  %v682_v45 = vunpack.c.h.bf16 %v230_v36  ;;  %v604_v52 = vunpack.c.h.bf16 %v191_v43 }
  0xc5   :  { %2900 = vmatprep.subr.mxu1 %v364_v46  ;;  %2830 = vmatpush1.msra.mxu0 %v361_v48  ;;  %v684_v46 = vunpack.c.h.bf16 %v231_v37  ;;  %v681_v48 = vunpack.c.l.bf16 %v230_v36  ;;  %v606_v53 = vunpack.c.h.bf16 %v192_v44  ;;  %v530_v36 = vunpack.c.h.bf16 %v154_v28 }
  0xc6   :  { %2863 = vmatprep.mubr.f32.mxu0 %v5185_v0  ;;  %2901 = vmatpush1.msra.mxu1 %v363_v51  ;;  %v153_v51 = vld [vmem:[#allocation5 + $0x328] sm:$0xff] }
  0xc7   :  { %2934 = vmatprep.mubr.f32.mxu1 %v5185_v0  ;;  %5023 = vmatmul.mubr.msk.f32.vlgmr.msra.gmra.mxu0 %vm1282_vm1, %v5295_v38  ;;  %v528_v59 = vunpack.c.h.bf16 %v153_v51 }
  0xc8   :  { %5026 = vmatmul.mubr.msk.f32.vlgmr.msra.gmra.mxu1 %vm1282_vm1, %v5295_v38  ;;  %5027 = vmatprep.subr.msk.mxu0 %vm1286_vm0, %v834_v54  ;;  %v603_v54 = vunpack.c.l.bf16 %v191_v43 }
  0xc9   :  { %5030 = vmatprep.subr.msk.mxu1 %vm1286_vm0, %v836_v55  ;;  %5028 = vmatpush1.msk.msra.mxu0 %vm1286_vm0, %v833_v56  ;;  %v605_v55 = vunpack.c.l.bf16 %v192_v44  ;;  %v113_v56 = vld [vmem:[#allocation5 + $0x1e8] sm:$0xff] }
  0xca   :  { %5031 = vmatpush1.msk.msra.mxu1 %vm1286_vm0, %v835_v57  ;;  %2961 = vmatprep.subr.mxu0 %v756_v60  ;;  %v114_v57 = vld [vmem:[#allocation5 + $0x1f0] sm:$0xff]  ;;  %v525_v60 = vunpack.c.l.bf16 %v152_v50  ;;  %v448_v1 = vunpack.c.h.bf16 %v113_v56 }
  0xcb   :  { %3032 = vmatprep.subr.mxu1 %v758_v61  ;;  %2962 = vmatpush1.msra.mxu0 %v755_v62  ;;  %v527_v61 = vunpack.c.l.bf16 %v153_v51  ;;  %v74_v62 = vld [vmem:[#allocation5 + $0xb0] sm:$0xff]  ;;  %v450_v2 = vunpack.c.h.bf16 %v114_v57 }
  0xcc   :  { %3033 = vmatpush1.msra.mxu1 %v757_v63  ;;  %2963 = vmatprep.subr.mxu0 %v678_v3  ;;  %v75_v63 = vld [vmem:[#allocation5 + $0xb8] sm:$0xff]  ;;  %v447_v3 = vunpack.c.l.bf16 %v113_v56  ;;  %v369_v47 = vunpack.c.l.bf16 %v74_v62  ;;  %v274_v56 = vld [vmem:[#allocation5 + $0x6f0] sm:$0xff] }
  0xcd   :  { %3034 = vmatprep.subr.mxu1 %v680_v4  ;;  %2964 = vmatpush1.msra.mxu0 %v677_v5  ;;  %v449_v4 = vunpack.c.l.bf16 %v114_v57  ;;  %v370_v5 = vunpack.c.h.bf16 %v74_v62  ;;  %v234_v62 = vld [vmem:[#allocation5 + $0x5b0] sm:$0xff] }
  0xce   :  { %3035 = vmatpush1.msra.mxu1 %v679_v6  ;;  %2965 = vmatprep.subr.mxu0 %v600_v8  ;;  %v372_v6 = vunpack.c.h.bf16 %v75_v63  ;;  %v311_v8 = vld [vmem:[#allocation5 + $0x818] sm:$0x11] }
  0xcf   :  { %3036 = vmatprep.subr.mxu1 %v602_v9  ;;  %2966 = vmatpush1.msra.mxu0 %v599_v10  ;;  %v371_v9 = vunpack.c.l.bf16 %v75_v63  ;;  %v271_v10 = vld [vmem:[#allocation5 + $0x6d8] sm:$0xff]  ;;  %v844_v13 = vunpack.c.h.bf16 %v311_v8 }
  0xd0   :  { %3037 = vmatpush1.msra.mxu1 %v601_v11  ;;  %2967 = vmatprep.subr.mxu0 %v522_v14  ;;  %v272_v11 = vld [vmem:[#allocation5 + $0x6e0] sm:$0xff]  ;;  %v841_v14 = vunpack.c.l.bf16 %v310_v7  ;;  %v764_v18 = vunpack.c.h.bf16 %v271_v10  ;;  %v235_v63 = vld [vmem:[#allocation5 + $0x5b8] sm:$0xff] }
  0xd1   :  { %3038 = vmatprep.subr.mxu1 %v524_v15  ;;  %2968 = vmatpush1.msra.mxu0 %v521_v16  ;;  %v843_v15 = vunpack.c.l.bf16 %v311_v8  ;;  %v232_v16 = vld [vmem:[#allocation5 + $0x5a0] sm:$0xff]  ;;  %v766_v19 = vunpack.c.h.bf16 %v272_v11  ;;  %v690_v8 = vunpack.c.h.bf16 %v234_v62 }
  0xd2   :  { %3039 = vmatpush1.msra.mxu1 %v523_v17  ;;  %2969 = vmatprep.subr.mxu0 %v444_v20  ;;  %v233_v17 = vld [vmem:[#allocation5 + $0x5a8] sm:$0xff]  ;;  %v763_v20 = vunpack.c.l.bf16 %v271_v10  ;;  %v156_v10 = vld [vmem:[#allocation5 + $0x340] sm:$0xff] }
  0xd3   :  { %3040 = vmatprep.subr.mxu1 %v446_v21  ;;  %2970 = vmatpush1.msra.mxu0 %v443_v22  ;;  %v765_v21 = vunpack.c.l.bf16 %v272_v11  ;;  %v193_v22 = vld [vmem:[#allocation5 + $0x468] sm:$0xff]  ;;  %v687_v27 = vunpack.c.l.bf16 %v233_v17 }
  0xd4   :  { %3041 = vmatpush1.msra.mxu1 %v445_v23  ;;  %2971 = vmatprep.subr.mxu0 %v366_v24  ;;  %v194_v23 = vld [vmem:[#allocation5 + $0x470] sm:$0xff]  ;;  %v686_v24 = vunpack.c.h.bf16 %v232_v16  ;;  %v608_v30 = vunpack.c.h.bf16 %v193_v22  ;;  %v5362_v11 = vld [vmem:[#allocation7] sm:$0xff] }
  0xd5   :  { %3042 = vmatprep.subr.mxu1 %v368_v25  ;;  %2972 = vmatpush1.msra.mxu0 %v365_v26  ;;  %v688_v25 = vunpack.c.h.bf16 %v233_v17  ;;  %v685_v26 = vunpack.c.l.bf16 %v232_v16  ;;  %v610_v31 = vunpack.c.h.bf16 %v194_v23  ;;  %v691_v16 = vunpack.c.l.bf16 %v235_v63  ;;  %v157_v17 = vld [vmem:[#allocation5 + $0x348] sm:$0xff] }
  0xd6   :  { %3005 = vmatprep.mubr.f32.mxu0 %v5185_v0  ;;  %3043 = vmatpush1.msra.mxu1 %v367_v29  ;;  %v155_v29 = vld [vmem:[#allocation5 + $0x338] sm:$0xff] }
  0xd7   :  { %3076 = vmatprep.mubr.f32.mxu1 %v5185_v0  ;;  %5029 = vmatmul.mubr.msk.f32.vlgmr.msra.gmra.mxu0 %vm1282_vm1, %v5295_v38  ;;  %v532_v37 = vunpack.c.h.bf16 %v155_v29 }
  0xd8   :  { %5032 = vmatmul.mubr.msk.f32.vlgmr.msra.gmra.mxu1 %vm1282_vm1, %v5295_v38  ;;  %5033 = vmatprep.subr.msk.mxu0 %vm1286_vm0, %v838_v32  ;;  %v607_v32 = vunpack.c.l.bf16 %v193_v22  ;;  %v117_v22 = vld [vmem:[#allocation5 + $0x208] sm:$0xff] }
  0xd9   :  { %5036 = vmatprep.subr.msk.mxu1 %vm1286_vm0, %v840_v33  ;;  %5034 = vmatpush1.msk.msra.mxu0 %vm1286_vm0, %v837_v34  ;;  %v609_v33 = vunpack.c.l.bf16 %v194_v23  ;;  %v115_v34 = vld [vmem:[#allocation5 + $0x1f8] sm:$0xff] }
  0xda   :  { %5037 = vmatpush1.msk.msra.mxu1 %vm1286_vm0, %v839_v35  ;;  %3103 = vmatprep.subr.mxu0 %v760_v39  ;;  %v116_v35 = vld [vmem:[#allocation5 + $0x200] sm:$0xff]  ;;  %v529_v39 = vunpack.c.l.bf16 %v154_v28  ;;  %v452_v43 = vunpack.c.h.bf16 %v115_v34 }
  0xdb   :  { %3174 = vmatprep.subr.mxu1 %v762_v40  ;;  %3104 = vmatpush1.msra.mxu0 %v759_v41  ;;  %v531_v40 = vunpack.c.l.bf16 %v155_v29  ;;  %v76_v41 = vld [vmem:[#allocation5 + $0xc0] sm:$0xff]  ;;  %v454_v44 = vunpack.c.h.bf16 %v116_v35  ;;  %v536_v29 = vunpack.c.h.bf16 %v157_v17 }
  0xdc   :  { %3175 = vmatpush1.msra.mxu1 %v761_v42  ;;  %3105 = vmatprep.subr.mxu0 %v682_v45  ;;  %v77_v42 = vld [vmem:[#allocation5 + $0xc8] sm:$0xff]  ;;  %v451_v45 = vunpack.c.l.bf16 %v115_v34  ;;  %v373_v51 = vunpack.c.l.bf16 %v76_v41  ;;  %v533_v34 = vunpack.c.l.bf16 %v156_v10 }
  0xdd   :  { %3176 = vmatprep.subr.mxu1 %v684_v46  ;;  %3106 = vmatpush1.msra.mxu0 %v681_v48  ;;  %v453_v46 = vunpack.c.l.bf16 %v116_v35  ;;  %v892_v48 = vlaneseq  ;;  %v376_v50 = vunpack.c.h.bf16 %v77_v42  ;;  %v535_v35 = vunpack.c.l.bf16 %v157_v17  ;;  %v237_v17 = vld [vmem:[#allocation5 + $0x5c8] sm:$0xff] }
  0xde   :  { %3177 = vmatpush1.msra.mxu1 %v683_v49  ;;  %3107 = vmatprep.subr.mxu0 %v604_v52  ;;  %v374_v49 = vunpack.c.h.bf16 %v76_v41  ;;  %v312_v52 = vld [vmem:[#allocation5 + $0x820] sm:$0x11] }
  0xdf   :  { %3178 = vmatprep.subr.mxu1 %v606_v53  ;;  %3108 = vmatpush1.msra.mxu0 %v603_v54  ;;  %v313_v53 = vld [vmem:[#allocation5 + $0x828] sm:$0x11]  ;;  %v375_v54 = vunpack.c.l.bf16 %v77_v42  ;;  %v5346_v57 = vshrl.u32 %v892_v48, 7  ;;  %vm4948_vm2 = vcmp.lt.s32.totalorder %v892_v48, 768 }
  0xe0   :  { %3179 = vmatpush1.msra.mxu1 %v605_v55  ;;  %3109 = vmatprep.subr.mxu0 %v526_v58  ;;  %v273_v55 = vld [vmem:[#allocation5 + $0x6e8] sm:$0xff]  ;;  %v846_v58 = vunpack.c.h.bf16 %v312_v52 }
  0xe1   :  { %3180 = vmatprep.subr.mxu1 %v528_v59  ;;  %3110 = vmatpush1.msra.mxu0 %v525_v60  ;;  %v848_v59 = vunpack.c.h.bf16 %v313_v53  ;;  %v845_v60 = vunpack.c.l.bf16 %v312_v52  ;;  %v5358_v7 = vsub.s32 1, %v5346_v57 }
  0xe2   :  { %3181 = vmatpush1.msra.mxu1 %v527_v61  ;;  %3111 = vmatprep.subr.mxu0 %v448_v1  ;;  %v847_v61 = vunpack.c.l.bf16 %v313_v53  ;;  %v768_v1 = vunpack.c.h.bf16 %v273_v55 }
  0xe3   :  { %3182 = vmatprep.subr.mxu1 %v450_v2  ;;  %3112 = vmatpush1.msra.mxu0 %v447_v3  ;;  %v770_v2 = vunpack.c.h.bf16 %v274_v56  ;;  %v767_v3 = vunpack.c.l.bf16 %v273_v55  ;;  %v899_v28 = vrot.slane %v5362_v11, %v5358_v7  ;;  %v5386_v55 = vsub.s32 6, %v5346_v57 }
  0xe4   :  { %3183 = vmatpush1.msra.mxu1 %v449_v4  ;;  %3113 = vmatprep.subr.mxu0 %v370_v5  ;;  %v769_v4 = vunpack.c.l.bf16 %v274_v56  ;;  %v195_v5 = vld [vmem:[#allocation5 + $0x478] sm:$0xff] }
  0xe5   :  { %3184 = vmatprep.subr.mxu1 %v372_v6  ;;  %3114 = vmatpush1.msra.mxu0 %v369_v47  ;;  %v196_v6 = vld [vmem:[#allocation5 + $0x480] sm:$0xff]  ;;  %v5355_v47 = vsub.s32 0, %v5346_v57 }
  0xe6   :  { %3147 = vmatprep.mubr.f32.mxu0 %v5185_v0  ;;  %3185 = vmatpush1.msra.mxu1 %v371_v9  ;;  %v692_v9 = vunpack.c.h.bf16 %v235_v63  ;;  %v613_v23 = vunpack.c.l.bf16 %v196_v6 }
  0xe7   :  { %3218 = vmatprep.mubr.f32.mxu1 %v5185_v0  ;;  %5035 = vmatmul.mubr.msk.f32.vlgmr.msra.gmra.mxu0 %vm1282_vm1, %v5295_v38 }
  0xe8   :  { %5038 = vmatmul.mubr.msk.f32.vlgmr.msra.gmra.mxu1 %vm1282_vm1, %v5295_v38  ;;  %5039 = vmatprep.subr.msk.mxu0 %vm1286_vm0, %v842_v12 }
  0xe9   :  { %5042 = vmatprep.subr.msk.mxu1 %vm1286_vm0, %v844_v13  ;;  %5040 = vmatpush1.msk.msra.mxu0 %vm1286_vm0, %v841_v14  ;;  %v5365_v13 = vsub.s32 2, %v5346_v57  ;;  %v5368_v14 = vsub.s32 3, %v5346_v57 }
  0xea   :  { %5043 = vmatpush1.msk.msra.mxu1 %vm1286_vm0, %v843_v15  ;;  %3245 = vmatprep.subr.mxu0 %v764_v18  ;;  %v689_v15 = vunpack.c.l.bf16 %v234_v62  ;;  %v5393_v62 = vsub.s32 7, %v5346_v57 }
  0xeb   :  { %3316 = vmatprep.subr.mxu1 %v766_v19  ;;  %3246 = vmatpush1.msra.mxu0 %v763_v20  ;;  %v611_v19 = vunpack.c.l.bf16 %v195_v5  ;;  %v612_v20 = vunpack.c.h.bf16 %v195_v5  ;;  %v5395_v5 = vld [vmem:[#allocation5 + $0x5c0] sm:$0xff] }
  0xec   :  { %3317 = vmatpush1.msra.mxu1 %v765_v21  ;;  %3247 = vmatprep.subr.mxu0 %v686_v24  ;;  %v614_v21 = vunpack.c.h.bf16 %v196_v6  ;;  %v534_v24 = vunpack.c.h.bf16 %v156_v10  ;;  %v919_v10 = vrot.slane %v5362_v11, %v5386_v55 }
  0xed   :  { %3318 = vmatprep.subr.mxu1 %v688_v25  ;;  %3248 = vmatpush1.msra.mxu0 %v685_v26  ;;  %v118_v25 = vld [vmem:[#allocation5 + $0x210] sm:$0xff] }
  0xee   :  { %3319 = vmatpush1.msra.mxu1 %v687_v27  ;;  %3249 = vmatprep.subr.mxu0 %v608_v30  ;;  %v78_v26 = vld [vmem:[#allocation5 + $0xd0] sm:$0xff]  ;;  %v895_v27 = vrot.slane %v5362_v11, %v5355_v47  ;;  %v79_v30 = vld [vmem:[#allocation5 + $0xd8] sm:$0xff]  ;;  %v458_v41 = vunpack.c.h.bf16 %v118_v25 }
  0xef   :  { %3320 = vmatprep.subr.mxu1 %v610_v31  ;;  %3250 = vmatpush1.msra.mxu0 %v607_v32  ;;  %v903_v31 = vrot.slane %v5362_v11, %v5365_v13  ;;  %v378_v42 = vunpack.c.h.bf16 %v78_v26  ;;  %v377_v56 = vunpack.c.l.bf16 %v78_v26 }
  0xf0   :  { %3321 = vmatpush1.msra.mxu1 %v609_v33  ;;  %3251 = vmatprep.subr.mxu0 %v530_v36  ;;  %v907_v33 = vrot.slane %v5362_v11, %v5368_v14  ;;  %v455_v36 = vunpack.c.l.bf16 %v117_v22 }
  0xf1   :  { %3322 = vmatprep.subr.mxu1 %v532_v37  ;;  %3252 = vmatpush1.msra.mxu0 %v529_v39  ;;  %v456_v39 = vunpack.c.h.bf16 %v117_v22 }
  0xf2   :  { %3323 = vmatpush1.msra.mxu1 %v531_v40  ;;  %3253 = vmatprep.subr.mxu0 %v452_v43  ;;  %v457_v40 = vunpack.c.l.bf16 %v118_v25  ;;  %v380_v43 = vunpack.c.h.bf16 %v79_v30  ;;  %v694_v25 = vunpack.c.h.bf16 %v5395_v5 }
  0xf3   :  { %3324 = vmatprep.subr.mxu1 %v454_v44  ;;  %3254 = vmatpush1.msra.mxu0 %v451_v45  ;;  %v5380_v44 = vld [vmem:[#allocation5 + $0x830] sm:$0x11] }
  0xf4   :  { %3325 = vmatpush1.msra.mxu1 %v453_v46  ;;  %3255 = vmatprep.subr.mxu0 %v374_v49  ;;  %v5186_v49 = vmov 1966171168  }
  0xf5   :  { %3326 = vmatprep.subr.mxu1 %v376_v50  ;;  %3256 = vmatpush1.msra.mxu0 %v373_v51  ;;  %v4451_v50 = vunpack.c.l.s4 %v5186_v49  ;;  %v315_v51 = vld [vmem:[#allocation5 + $0x838] sm:$0x11] }
  0xf6   :  { %3289 = vmatprep.mubr.f32.mxu0 %v5185_v0  ;;  %3327 = vmatpush1.msra.mxu1 %v375_v54  ;;  %v5383_v54 = vsub.s32 4, %v5346_v57  ;;  %v852_v63 = vunpack.c.h.bf16 %v315_v51 }
  0xf7   :  { %3360 = vmatprep.mubr.f32.mxu1 %v5185_v0  ;;  %5041 = vmatmul.mubr.msk.f32.vlgmr.msra.gmra.mxu0 %vm1282_vm1, %v5295_v38  ;;  %v1587_v12 = vpop.f32.mrf.mxu0 }
  0xf8   :  { %5044 = vmatmul.mubr.msk.f32.vlgmr.msra.gmra.mxu1 %vm1282_vm1, %v5295_v38  ;;  %5045 = vmatprep.subr.msk.mxu0 %vm1286_vm0, %v846_v58  ;;  %v1658_v18 = vpop.f32.mrf.mxu1  ;;  %v1588_v45 = vadd.f32 %v1587_v12, %v895_v27  ;;  %v379_v58 = vunpack.c.l.bf16 %v79_v30  ;;  %v849_v12 = vunpack.c.l.bf16 %v5380_v44  ;;  %v158_v30 = vld [vmem:[#allocation5 + $0x350] sm:$0xff] }
  0xf9   :  { %5048 = vmatprep.subr.msk.mxu1 %vm1286_vm0, %v848_v59  ;;  %5046 = vmatpush1.msk.msra.mxu0 %vm1286_vm0, %v845_v60  ;;  %v1589_v32 = vpop.f32.mrf.mxu0  ;;  %v1659_v52 = vadd.f32 %v1658_v18, %v903_v31  ;;  %v850_v59 = vunpack.c.h.bf16 %v5380_v44  ;;  %v275_v60 = vld [vmem:[#allocation5 + $0x6f8] sm:$0xff] }
  0xfa   :  { %5049 = vmatpush1.msk.msra.mxu1 %vm1286_vm0, %v847_v61  ;;  %3387 = vmatprep.subr.mxu0 %v768_v1  ;;  %v1660_v37 = vpop.f32.mrf.mxu1  ;;  %v1590_v46 = vadd.f32 %v1589_v32, %v899_v28  ;;  %v5390_v61 = vsub.s32 5, %v5346_v57  ;;  %v276_v1 = vld [vmem:[#allocation5 + $0x700] sm:$0xff]  ;;  %v772_v18 = vunpack.c.h.bf16 %v275_v60  ;;  %v159_v31 = vld [vmem:[#allocation5 + $0x358] sm:$0xff] }
  0xfb   :  { %3458 = vmatprep.subr.mxu1 %v770_v2  ;;  %3388 = vmatpush1.msra.mxu0 %v767_v3  ;;  %v1661_v53 = vadd.f32 %v1660_v37, %v907_v33  ;;  %v4290_v2 = vmax.f32 %v1588_v45, 0.0  ;;  %v4292_v6 = vmax.f32 %v1659_v52, 0.0  ;;  %v540_v49 = vunpack.c.h.bf16 %v159_v31 }
  0xfc   :  { %3459 = vmatpush1.msra.mxu1 %v769_v4  ;;  %3389 = vmatprep.subr.mxu0 %v690_v8  ;;  %v4291_v3 = vmax.f32 %v1590_v46, 0.0  ;;  %v4452_v4 = vunpack.c.0.s8 %v4451_v50  ;;  %v915_v22 = vrot.slane %v5362_v11, %v5390_v61  ;;  %v538_v46 = vunpack.c.h.bf16 %v158_v30  ;;  %v119_v50 = vld [vmem:[#allocation5 + $0x218] sm:$0xff] }
  0xfd   :  { %3460 = vmatprep.subr.mxu1 %v692_v9  ;;  %3390 = vmatpush1.msra.mxu0 %v689_v15  ;;  %v4293_v8 = vmax.f32 %v1661_v53, 0.0  ;;  %v911_v9 = vrot.slane %v5362_v11, %v5383_v54  ;;  %v851_v15 = vunpack.c.l.bf16 %v315_v51  ;;  %v120_v51 = vld [vmem:[#allocation5 + $0x220] sm:$0xff] }
  0xfe   :  { %3461 = vmatpush1.msra.mxu1 %v691_v16  ;;  %3391 = vmatprep.subr.mxu0 %v612_v20  ;;  %v771_v16 = vunpack.c.l.bf16 %v275_v60  ;;  %v197_v20 = vld [vmem:[#allocation5 + $0x488] sm:$0xff]  ;;  %v4446_v26 = vcombine.low %v4290_v2, %v4291_v3  ;;  %v5414_v27 = vsub.s32 %v4452_v4, %v5346_v57  ;;  %v695_v57 = vunpack.c.l.bf16 %v237_v17 }
  0xff   :  { %3462 = vmatprep.subr.mxu1 %v614_v21  ;;  %3392 = vmatpush1.msra.mxu0 %v611_v19  ;;  %v774_v19 = vunpack.c.h.bf16 %v276_v1  ;;  %v198_v21 = vld [vmem:[#allocation5 + $0x490] sm:$0xff]  ;;  %v4447_v32 = vcombine.low %v4292_v6, %v4293_v8  ;;  %v615_v44 = vunpack.c.l.bf16 %v197_v20  ;;  %v537_v60 = vunpack.c.l.bf16 %v158_v30 }
 0x100   :  { %3463 = vmatpush1.msra.mxu1 %v613_v23  ;;  %3393 = vmatprep.subr.mxu0 %v534_v24  ;;  %v923_v23 = vrot.slane %v5362_v11, %v5393_v62  ;;  %v773_v24 = vunpack.c.l.bf16 %v276_v1  ;;  %v696_v11 = vunpack.c.h.bf16 %v237_v17  ;;  %v617_v45 = vunpack.c.l.bf16 %v198_v21  ;;  %v81_v1 = vld [vmem:[#allocation5 + $0xe8] sm:$0xff]  ;;  %v238_v30 = vld [vmem:[#allocation5 + $0x5d0] sm:$0xff] }
 0x101   :  { %3464 = vmatprep.subr.mxu1 %v536_v29  ;;  %3394 = vmatpush1.msra.mxu0 %v533_v34  ;;  %v4456_v52 = vrot.slane %v4446_v26, %v5414_v27  ;;  %v4463_v53 = vrot.slane %v4447_v32, %v5414_v27  ;;  %v460_v2 = vunpack.c.h.bf16 %v119_v50  ;;  %v462_v3 = vunpack.c.h.bf16 %v120_v51 }
 0x102   :  { %3465 = vmatpush1.msra.mxu1 %v535_v35  ;;  %3395 = vmatprep.subr.mxu0 %v456_v39  ;;  %v616_v35 = vunpack.c.h.bf16 %v197_v20  ;;  %v459_v6 = vunpack.c.l.bf16 %v119_v50  ;;  %v461_v8 = vunpack.c.l.bf16 %v120_v51  ;;  %v383_v20 = vunpack.c.l.bf16 %v81_v1 }
 0x103   :  { %3466 = vmatprep.subr.mxu1 %v458_v41  ;;  %3396 = vmatpush1.msra.mxu0 %v455_v36  ;;  %v618_v36 = vunpack.c.h.bf16 %v198_v21 }
 0x104   :  { %3467 = vmatpush1.msra.mxu1 %v457_v40  ;;  %3397 = vmatprep.subr.mxu0 %v378_v42 }
 0x105   :  { %3468 = vmatprep.subr.mxu1 %v380_v43  ;;  %3398 = vmatpush1.msra.mxu0 %v377_v56  ;;  %v80_v56 = vld [vmem:[#allocation5 + $0xe0] sm:$0xff] }
 0x106   :  { %3431 = vmatprep.mubr.f32.mxu0 %v5185_v0  ;;  %3469 = vmatpush1.msra.mxu1 %v379_v58  ;;  %v381_v17 = vunpack.c.l.bf16 %v80_v56 }
 0x107   :  { %3502 = vmatprep.mubr.f32.mxu1 %v5185_v0  ;;  %5047 = vmatmul.mubr.msk.f32.vlgmr.msra.gmra.mxu0 %vm1282_vm1, %v5295_v38  ;;  %v1729_v28 = vpop.f32.mrf.mxu0 }
 0x108   :  { %5050 = vmatmul.mubr.msk.f32.vlgmr.msra.gmra.mxu1 %vm1282_vm1, %v5295_v38  ;;  %v1800_v29 = vpop.f32.mrf.mxu1  ;;  %5051 = vmatprep.subr.msk.mxu0 %vm1286_vm0, %v850_v59  ;;  %v1730_v33 = vadd.f32 %v1729_v28, %v911_v9  ;;  %v693_v38 = vunpack.c.l.bf16 %v5395_v5  ;;  %v382_v9 = vunpack.c.h.bf16 %v80_v56  ;;  %v121_v56 = vld [vmem:[#allocation5 + $0x228] sm:$0xff] }
 0x109   :  { %5054 = vmatprep.subr.msk.mxu1 %vm1286_vm0, %v852_v63  ;;  %v1801_v34 = vadd.f32 %v1800_v29, %v919_v10  ;;  %5052 = vmatpush1.msk.msra.mxu0 %vm1286_vm0, %v849_v12  ;;  %v1731_v37 = vpop.f32.mrf.mxu0  ;;  %v539_v63 = vunpack.c.l.bf16 %v159_v31  ;;  %v4478_v10 = vcombine.low %v4456_v52, %v4463_v53  ;;  %v384_v12 = vunpack.c.h.bf16 %v81_v1  ;;  %v239_v31 = vld [vmem:[#allocation5 + $0x5d8] sm:$0xff] }
 0x10a   :  { %5055 = vmatpush1.msk.msra.mxu1 %vm1286_vm0, %v851_v15  ;;  %v1802_v39 = vpop.f32.mrf.mxu1  ;;  %3529 = vmatprep.subr.mxu0 %v772_v18  ;;  %v4294_v40 = vmax.f32 %v1730_v33, 0.0  ;;  %v1732_v42 = vadd.f32 %v1731_v37, %v915_v22  ;;  %v316_v18 = vld [vmem:[#allocation5 + $0x840] sm:$0x11]  ;;  %v277_v22 = vld [vmem:[#allocation5 + $0x708] sm:$0xff] }
 0x10b   :  { %3600 = vmatprep.subr.mxu1 %v774_v19  ;;  %v4296_v41 = vmax.f32 %v1801_v34, 0.0  ;;  %v1803_v43 = vadd.f32 %v1802_v39, %v923_v23  ;;  %3530 = vmatpush1.msra.mxu0 %v771_v16  ;;  %v317_v19 = vld [vmem:[#allocation5 + $0x848] sm:$0x11]  ;;  %v278_v23 = vld [vmem:[#allocation5 + $0x710] sm:$0xff]  ;;  %v853_v29 = vunpack.c.l.bf16 %v316_v18  ;;  %v776_v32 = vunpack.c.h.bf16 %v277_v22  ;;  %v200_v37 = vld [vmem:[#allocation5 + $0x4a0] sm:$0xff] }
 0x10c   :  { %3601 = vmatpush1.msra.mxu1 %v773_v24  ;;  %3531 = vmatprep.subr.mxu0 %v694_v25  ;;  %v4295_v58 = vmax.f32 %v1732_v42, 0.0  ;;  %v4486_v24 = vrot.slane %v4478_v10, %v5414_v27  ;;  %v854_v25 = vunpack.c.h.bf16 %v316_v18  ;;  %v856_v26 = vunpack.c.h.bf16 %v317_v19 }
 0x10d   :  { %3602 = vmatprep.subr.mxu1 %v696_v11  ;;  %v4297_v59 = vmax.f32 %v1803_v43, 0.0  ;;  %3532 = vmatpush1.msra.mxu0 %v693_v38  ;;  %v855_v11 = vunpack.c.l.bf16 %v317_v19  ;;  %v778_v33 = vunpack.c.h.bf16 %v278_v23  ;;  %v5429_v38 = vld [vmem:[#allocation2] sm:$0x1]  ;;  %v698_v39 = vunpack.c.h.bf16 %v238_v30 }
 0x10e   :  { %3603 = vmatpush1.msra.mxu1 %v695_v57  ;;  %3533 = vmatprep.subr.mxu0 %v616_v35  ;;  %v4448_v4 = vcombine.low %v4294_v40, %v4295_v58  ;;  %v775_v57 = vunpack.c.l.bf16 %v277_v22  ;;  %v777_v35 = vunpack.c.l.bf16 %v278_v23  ;;  %v700_v40 = vunpack.c.h.bf16 %v239_v31  ;;  %v122_v58 = vld [vmem:[#allocation5 + $0x230] sm:$0xff]  ;;  %v319_v23 = vld [vmem:[#allocation5 + $0x858] sm:$0x11] }
 0x10f   :  { %3604 = vmatprep.subr.mxu1 %v618_v36  ;;  %v4449_v5 = vcombine.low %v4296_v41, %v4297_v59  ;;  %3534 = vmatpush1.msra.mxu0 %v615_v44  ;;  %v199_v36 = vld [vmem:[#allocation5 + $0x498] sm:$0xff]  ;;  %v5437_v41 = vld [vmem:[#allocation7 + $0x8] sm:$0xff]  ;;  %v697_v43 = vunpack.c.l.bf16 %v238_v30  ;;  %v699_v44 = vunpack.c.l.bf16 %v239_v31  ;;  %v622_v51 = vunpack.c.h.bf16 %v200_v37  ;;  %v280_v31 = vld [vmem:[#allocation5 + $0x720] sm:$0xff] }
 0x110   :  { %3605 = vmatpush1.msra.mxu1 %v617_v45  ;;  %3535 = vmatprep.subr.mxu0 %v538_v46  ;;  %v4470_v15 = vrot.slane %v4448_v4, %v5414_v27  ;;  %v160_v45 = vld [vmem:[#allocation5 + $0x360] sm:$0xff]  ;;  %v161_v46 = vld [vmem:[#allocation5 + $0x368] sm:$0xff]  ;;  %v620_v50 = vunpack.c.h.bf16 %v199_v36  ;;  %v619_v52 = vunpack.c.l.bf16 %v199_v36  ;;  %v621_v53 = vunpack.c.l.bf16 %v200_v37  ;;  %v318_v22 = vld [vmem:[#allocation5 + $0x850] sm:$0x11] }
 0x111   :  { %3606 = vmatprep.subr.mxu1 %v540_v49  ;;  %v4477_v16 = vrot.slane %v4449_v5, %v5414_v27  ;;  %3536 = vmatpush1.msra.mxu0 %v537_v60  ;;  %v927_v59 = vrot.slane %v5437_v41, %v5355_v47  ;;  %v931_v60 = vrot.slane %v5437_v41, %v5358_v7  ;;  %v544_v1 = vunpack.c.h.bf16 %v161_v46  ;;  %v279_v30 = vld [vmem:[#allocation5 + $0x718] sm:$0xff] }
 0x112   :  { %3607 = vmatpush1.msra.mxu1 %v539_v63  ;;  %3537 = vmatprep.subr.mxu0 %v460_v2  ;;  %v542_v63 = vunpack.c.h.bf16 %v160_v45  ;;  %v935_v2 = vrot.slane %v5437_v41, %v5365_v13  ;;  %v939_v4 = vrot.slane %v5437_v41, %v5368_v14  ;;  %v541_v5 = vunpack.c.l.bf16 %v160_v45  ;;  %v201_v45 = vld [vmem:[#allocation5 + $0x4a8] sm:$0xff] }
 0x113   :  { %3608 = vmatprep.subr.mxu1 %v462_v3  ;;  %v4479_v21 = vcombine.low %v4470_v15, %v4477_v16  ;;  %3538 = vmatpush1.msra.mxu0 %v459_v6  ;;  %v543_v6 = vunpack.c.l.bf16 %v161_v46  ;;  %v466_v15 = vunpack.c.h.bf16 %v122_v58  ;;  %v463_v16 = vunpack.c.l.bf16 %v121_v56  ;;  %v202_v46 = vld [vmem:[#allocation5 + $0x4b0] sm:$0xff] }
 0x114   :  { %3609 = vmatpush1.msra.mxu1 %v461_v8  ;;  %3539 = vmatprep.subr.mxu0 %v382_v9  ;;  %v82_v8 = vld [vmem:[#allocation5 + $0xf0] sm:$0xff]  ;;  %v83_v9 = vld [vmem:[#allocation5 + $0xf8] sm:$0xff]  ;;  %v943_v36 = vrot.slane %v5437_v41, %v5383_v54  ;;  %v951_v37 = vrot.slane %v5437_v41, %v5386_v55 }
 0x115   :  { %3610 = vmatprep.subr.mxu1 %v384_v12  ;;  %v4493_v28 = vrot.slane %v4479_v21, %v5414_v27  ;;  %3540 = vmatpush1.msra.mxu0 %v381_v17  ;;  %v464_v12 = vunpack.c.h.bf16 %v121_v56  ;;  %v465_v17 = vunpack.c.l.bf16 %v122_v58  ;;  %v388_v21 = vunpack.c.h.bf16 %v83_v9 }
 0x116   :  { %3573 = vmatprep.mubr.f32.mxu0 %v5185_v0  ;;  %3611 = vmatpush1.msra.mxu1 %v383_v20  ;;  %v386_v20 = vunpack.c.h.bf16 %v82_v8 }
 0x117   :  { %3644 = vmatprep.mubr.f32.mxu1 %v5185_v0  ;;  %v4494_v34 = vcombine.low %v4486_v24, %v4493_v28  ;;  %5053 = vmatmul.mubr.msk.f32.vlgmr.msra.gmra.mxu0 %vm1282_vm1, %v5429_v38  ;;  %v1871_v42 = vpop.f32.mrf.mxu0  ;;  %v387_v28 = vunpack.c.l.bf16 %v83_v9 }
 0x118   :  { %5056 = vmatmul.mubr.msk.f32.vlgmr.msra.gmra.mxu1 %vm1282_vm1, %v5429_v38  ;;  %5057 = vmatprep.subr.msk.mxu0 %vm1286_vm0, %v854_v25  ;;  %v1942_v49 = vpop.f32.mrf.mxu1  ;;  %v1872_v18 = vadd.f32 %v1871_v42, %v927_v59  ;;  %v241_v42 = vld [vmem:[#allocation5 + $0x5e8] sm:$0xff] }
 0x119   :  { %5060 = vmatprep.subr.msk.mxu1 %vm1286_vm0, %v856_v26  ;;  %4937 = vst [vmem:[#allocation8] sm:$0xff] %v4494_v34  ;;  %5058 = vmatpush1.msk.msra.mxu0 %vm1286_vm0, %v853_v29  ;;  %v1873_v3 = vpop.f32.mrf.mxu0  ;;  %v1943_v24 = vadd.f32 %v1942_v49, %v935_v2  ;;  %v385_v26 = vunpack.c.l.bf16 %v82_v8  ;;  %v858_v29 = vunpack.c.h.bf16 %v318_v22  ;;  %v5449_v34 = vld [vmem:[#allocation5 + $0x5e0] sm:$0xff]  ;;  %v947_v49 = vrot.slane %v5437_v41, %v5390_v61 }
 0x11a   :  { %5061 = vmatpush1.msk.msra.mxu1 %vm1286_vm0, %v855_v11  ;;  %3671 = vmatprep.subr.mxu0 %v776_v32  ;;  %v1944_v10 = vpop.f32.mrf.mxu1  ;;  %v1874_v19 = vadd.f32 %v1873_v3, %v931_v60  ;;  %v860_v11 = vunpack.c.h.bf16 %v319_v23  ;;  %v4298_v32 = vmax.f32 %v1872_v18, 0.0  ;;  %v704_v60 = vunpack.c.h.bf16 %v241_v42 }
 0x11b   :  { %3742 = vmatprep.subr.mxu1 %v778_v33  ;;  %3672 = vmatpush1.msra.mxu0 %v775_v57  ;;  %v1945_v25 = vadd.f32 %v1944_v10, %v939_v4  ;;  %v4300_v57 = vmax.f32 %v1943_v24, 0.0  ;;  %v701_v4 = vunpack.c.l.bf16 %v5449_v34  ;;  %v626_v8 = vunpack.c.h.bf16 %v202_v46 }
 0x11c   :  { %3743 = vmatpush1.msra.mxu1 %v777_v35  ;;  %3673 = vmatprep.subr.mxu0 %v698_v39  ;;  %v4299_v33 = vmax.f32 %v1874_v19, 0.0  ;;  %v857_v39 = vunpack.c.l.bf16 %v318_v22  ;;  %v623_v18 = vunpack.c.l.bf16 %v201_v45  ;;  %v625_v19 = vunpack.c.l.bf16 %v202_v46  ;;  %v123_v22 = vld [vmem:[#allocation5 + $0x238] sm:$0xff]  ;;  %v321_v46 = vld [vmem:[#allocation5 + $0x868] sm:$0x11] }
 0x11d   :  { %3744 = vmatprep.subr.mxu1 %v700_v40  ;;  %3674 = vmatpush1.msra.mxu0 %v697_v43  ;;  %v4301_v35 = vmax.f32 %v1945_v25, 0.0  ;;  %v859_v40 = vunpack.c.l.bf16 %v319_v23  ;;  %v780_v43 = vunpack.c.h.bf16 %v279_v30  ;;  %v124_v23 = vld [vmem:[#allocation5 + $0x240] sm:$0xff] }
 0x11e   :  { %3745 = vmatpush1.msra.mxu1 %v699_v44  ;;  %3675 = vmatprep.subr.mxu0 %v620_v50  ;;  %v782_v44 = vunpack.c.h.bf16 %v280_v31  ;;  %v955_v50 = vrot.slane %v5437_v41, %v5393_v62  ;;  %v4495_v56 = vcombine.low %v4298_v32, %v4299_v33  ;;  %v163_v41 = vld [vmem:[#allocation5 + $0x378] sm:$0xff]  ;;  %v468_v32 = vunpack.c.h.bf16 %v123_v22 }
 0x11f   :  { %3746 = vmatprep.subr.mxu1 %v622_v51  ;;  %3676 = vmatpush1.msra.mxu0 %v619_v52  ;;  %v779_v51 = vunpack.c.l.bf16 %v279_v30  ;;  %v781_v52 = vunpack.c.l.bf16 %v280_v31  ;;  %v547_v30 = vunpack.c.l.bf16 %v163_v41  ;;  %v85_v31 = vld [vmem:[#allocation5 + $0x108] sm:$0xff]  ;;  %v470_v33 = vunpack.c.h.bf16 %v124_v23 }
 0x120   :  { %3747 = vmatpush1.msra.mxu1 %v621_v53  ;;  %3677 = vmatprep.subr.mxu0 %v542_v63  ;;  %v702_v53 = vunpack.c.h.bf16 %v5449_v34  ;;  %v162_v63 = vld [vmem:[#allocation5 + $0x370] sm:$0xff]  ;;  %v4505_v24 = vrot.slane %v4495_v56, %v5414_v27 }
 0x121   :  { %3748 = vmatprep.subr.mxu1 %v544_v1  ;;  %3678 = vmatpush1.msra.mxu0 %v541_v5  ;;  %v4496_v1 = vcombine.low %v4300_v57, %v4301_v35  ;;  %v703_v5 = vunpack.c.l.bf16 %v241_v42  ;;  %v467_v35 = vunpack.c.l.bf16 %v123_v22 }
 0x122   :  { %3749 = vmatpush1.msra.mxu1 %v543_v6  ;;  %3679 = vmatprep.subr.mxu0 %v464_v12  ;;  %v624_v6 = vunpack.c.h.bf16 %v201_v45  ;;  %v320_v45 = vld [vmem:[#allocation5 + $0x860] sm:$0x11] }
 0x123   :  { %3750 = vmatprep.subr.mxu1 %v466_v15  ;;  %3680 = vmatpush1.msra.mxu0 %v463_v16  ;;  %v4512_v25 = vrot.slane %v4496_v1, %v5414_v27  ;;  %v862_v56 = vunpack.c.h.bf16 %v320_v45  ;;  %v243_v1 = vld [vmem:[#allocation5 + $0x5f8] sm:$0xff] }
 0x124   :  { %3751 = vmatpush1.msra.mxu1 %v465_v17  ;;  %3681 = vmatprep.subr.mxu0 %v386_v20  ;;  %v546_v20 = vunpack.c.h.bf16 %v162_v63 }
 0x125   :  { %3752 = vmatprep.subr.mxu1 %v388_v21  ;;  %3682 = vmatpush1.msra.mxu0 %v385_v26  ;;  %v548_v21 = vunpack.c.h.bf16 %v163_v41  ;;  %v84_v26 = vld [vmem:[#allocation5 + $0x100] sm:$0xff]  ;;  %v242_v41 = vld [vmem:[#allocation5 + $0x5f0] sm:$0xff] }
 0x126   :  { %3715 = vmatprep.mubr.f32.mxu0 %v5185_v0  ;;  %3753 = vmatpush1.msra.mxu1 %v387_v28 }
 0x127   :  { %3786 = vmatprep.mubr.f32.mxu1 %v5185_v0  ;;  %5059 = vmatmul.mubr.msk.f32.vlgmr.msra.gmra.mxu0 %vm1282_vm1, %v5429_v38  ;;  %v2013_v58 = vpop.f32.mrf.mxu0 }
 0x128   :  { %5062 = vmatmul.mubr.msk.f32.vlgmr.msra.gmra.mxu1 %vm1282_vm1, %v5429_v38  ;;  %v2084_v59 = vpop.f32.mrf.mxu1  ;;  %5063 = vmatprep.subr.msk.mxu0 %vm1286_vm0, %v858_v29  ;;  %v2014_v2 = vadd.f32 %v2013_v58, %v943_v36  ;;  %v469_v36 = vunpack.c.l.bf16 %v124_v23  ;;  %v864_v58 = vunpack.c.h.bf16 %v321_v46 }
 0x129   :  { %5066 = vmatprep.subr.msk.mxu1 %vm1286_vm0, %v860_v11  ;;  %v2085_v3 = vadd.f32 %v2084_v59, %v951_v37  ;;  %5064 = vmatpush1.msk.msra.mxu0 %vm1286_vm0, %v857_v39  ;;  %v2015_v9 = vpop.f32.mrf.mxu0  ;;  %v545_v11 = vunpack.c.l.bf16 %v162_v63  ;;  %v390_v37 = vunpack.c.h.bf16 %v84_v26  ;;  %v4527_v39 = vcombine.low %v4505_v24, %v4512_v25 }
 0x12a   :  { %5067 = vmatpush1.msk.msra.mxu1 %vm1286_vm0, %v859_v40  ;;  %v2086_v10 = vpop.f32.mrf.mxu1  ;;  %3813 = vmatprep.subr.mxu0 %v780_v43  ;;  %v4302_v12 = vmax.f32 %v2014_v2, 0.0  ;;  %v2016_v16 = vadd.f32 %v2015_v9, %v947_v49  ;;  %v392_v40 = vunpack.c.h.bf16 %v85_v31  ;;  %v391_v49 = vunpack.c.l.bf16 %v85_v31  ;;  %v204_v9 = vld [vmem:[#allocation5 + $0x4c0] sm:$0xff] }
 0x12b   :  { %3884 = vmatprep.subr.mxu1 %v782_v44  ;;  %v4304_v15 = vmax.f32 %v2085_v3, 0.0  ;;  %v2087_v17 = vadd.f32 %v2086_v10, %v955_v50  ;;  %3814 = vmatpush1.msra.mxu0 %v779_v51  ;;  %v389_v44 = vunpack.c.l.bf16 %v84_v26  ;;  %v281_v51 = vld [vmem:[#allocation5 + $0x728] sm:$0xff]  ;;  %v863_v63 = vunpack.c.l.bf16 %v321_v46 }
 0x12c   :  { %3885 = vmatpush1.msra.mxu1 %v781_v52  ;;  %3815 = vmatprep.subr.mxu0 %v702_v53  ;;  %v4303_v28 = vmax.f32 %v2016_v16, 0.0  ;;  %v282_v52 = vld [vmem:[#allocation5 + $0x730] sm:$0xff]  ;;  %v4535_v53 = vrot.slane %v4527_v39, %v5414_v27  ;;  %v784_v2 = vunpack.c.h.bf16 %v281_v51  ;;  %v706_v10 = vunpack.c.h.bf16 %v242_v41  ;;  %v125_v26 = vld [vmem:[#allocation5 + $0x248] sm:$0xff] }
 0x12d   :  { %3886 = vmatprep.subr.mxu1 %v704_v60  ;;  %v4305_v29 = vmax.f32 %v2087_v17, 0.0  ;;  %3816 = vmatpush1.msra.mxu0 %v701_v4  ;;  %v861_v60 = vunpack.c.l.bf16 %v320_v45  ;;  %v786_v3 = vunpack.c.h.bf16 %v282_v52  ;;  %v705_v17 = vunpack.c.l.bf16 %v242_v41  ;;  %v283_v41 = vld [vmem:[#allocation5 + $0x738] sm:$0xff] }
 0x12e   :  { %3887 = vmatpush1.msra.mxu1 %v703_v5  ;;  %3817 = vmatprep.subr.mxu0 %v624_v6  ;;  %v4497_v34 = vcombine.low %v4302_v12, %v4303_v28  ;;  %v783_v5 = vunpack.c.l.bf16 %v281_v51  ;;  %v785_v6 = vunpack.c.l.bf16 %v282_v52  ;;  %v708_v12 = vunpack.c.h.bf16 %v243_v1  ;;  %v126_v28 = vld [vmem:[#allocation5 + $0x250] sm:$0xff]  ;;  %v323_v52 = vld [vmem:[#allocation5 + $0x878] sm:$0x11] }
 0x12f   :  { %3888 = vmatprep.subr.mxu1 %v626_v8  ;;  %v4498_v57 = vcombine.low %v4304_v15, %v4305_v29  ;;  %3818 = vmatpush1.msra.mxu0 %v623_v18  ;;  %v203_v8 = vld [vmem:[#allocation5 + $0x4b8] sm:$0xff]  ;;  %v707_v18 = vunpack.c.l.bf16 %v243_v1  ;;  %v630_v23 = vunpack.c.h.bf16 %v204_v9  ;;  %v629_v25 = vunpack.c.l.bf16 %v204_v9  ;;  %v322_v51 = vld [vmem:[#allocation5 + $0x870] sm:$0x11]  ;;  %v284_v1 = vld [vmem:[#allocation5 + $0x740] sm:$0xff] }
 0x130   :  { %3889 = vmatpush1.msra.mxu1 %v625_v19  ;;  %3819 = vmatprep.subr.mxu0 %v546_v20  ;;  %v4519_v42 = vrot.slane %v4497_v34, %v5414_v27  ;;  %v5485_v15 = vld [vmem:[#allocation7 + $0x10] sm:$0xff]  ;;  %v164_v19 = vld [vmem:[#allocation5 + $0x380] sm:$0xff]  ;;  %v165_v20 = vld [vmem:[#allocation5 + $0x388] sm:$0xff]  ;;  %v628_v22 = vunpack.c.h.bf16 %v203_v8  ;;  %v627_v24 = vunpack.c.l.bf16 %v203_v8 }
 0x131   :  { %3890 = vmatprep.subr.mxu1 %v548_v21  ;;  %v4526_v43 = vrot.slane %v4498_v57, %v5414_v27  ;;  %3820 = vmatpush1.msra.mxu0 %v545_v11  ;;  %v959_v29 = vrot.slane %v5485_v15, %v5355_v47  ;;  %v963_v11 = vrot.slane %v5485_v15, %v5358_v7  ;;  %v552_v31 = vunpack.c.h.bf16 %v165_v20 }
 0x132   :  { %3891 = vmatpush1.msra.mxu1 %v547_v30  ;;  %3821 = vmatprep.subr.mxu0 %v468_v32  ;;  %v550_v30 = vunpack.c.h.bf16 %v164_v19  ;;  %v967_v32 = vrot.slane %v5485_v15, %v5365_v13  ;;  %v971_v34 = vrot.slane %v5485_v15, %v5368_v14  ;;  %v549_v57 = vunpack.c.l.bf16 %v164_v19  ;;  %v205_v19 = vld [vmem:[#allocation5 + $0x4c8] sm:$0xff] }
 0x133   :  { %3892 = vmatprep.subr.mxu1 %v470_v33  ;;  %v4528_v50 = vcombine.low %v4519_v42, %v4526_v43  ;;  %3822 = vmatpush1.msra.mxu0 %v467_v35  ;;  %v551_v35 = vunpack.c.l.bf16 %v165_v20  ;;  %v474_v42 = vunpack.c.h.bf16 %v126_v28  ;;  %v471_v43 = vunpack.c.l.bf16 %v125_v26  ;;  %v206_v20 = vld [vmem:[#allocation5 + $0x4d0] sm:$0xff] }
 0x134   :  { %3893 = vmatpush1.msra.mxu1 %v469_v36  ;;  %3823 = vmatprep.subr.mxu0 %v390_v37  ;;  %v86_v36 = vld [vmem:[#allocation5 + $0x110] sm:$0xff]  ;;  %v87_v37 = vld [vmem:[#allocation5 + $0x118] sm:$0xff]  ;;  %v975_v8 = vrot.slane %v5485_v15, %v5383_v54  ;;  %v983_v9 = vrot.slane %v5485_v15, %v5386_v55 }
 0x135   :  { %3894 = vmatprep.subr.mxu1 %v392_v40  ;;  %v4542_v59 = vrot.slane %v4528_v50, %v5414_v27  ;;  %3824 = vmatpush1.msra.mxu0 %v389_v44  ;;  %v472_v40 = vunpack.c.h.bf16 %v125_v26  ;;  %v473_v44 = vunpack.c.l.bf16 %v126_v28  ;;  %v396_v50 = vunpack.c.h.bf16 %v87_v37 }
 0x136   :  { %3857 = vmatprep.mubr.f32.mxu0 %v5185_v0  ;;  %3895 = vmatpush1.msra.mxu1 %v391_v49  ;;  %v394_v49 = vunpack.c.h.bf16 %v86_v36 }
 0x137   :  { %3928 = vmatprep.mubr.f32.mxu1 %v5185_v0  ;;  %v4543_v4 = vcombine.low %v4535_v53, %v4542_v59  ;;  %5065 = vmatmul.mubr.msk.f32.vlgmr.msra.gmra.mxu0 %vm1282_vm1, %v5429_v38  ;;  %v2155_v16 = vpop.f32.mrf.mxu0  ;;  %v395_v59 = vunpack.c.l.bf16 %v87_v37 }
 0x138   :  { %5068 = vmatmul.mubr.msk.f32.vlgmr.msra.gmra.mxu1 %vm1282_vm1, %v5429_v38  ;;  %5069 = vmatprep.subr.msk.mxu0 %vm1286_vm0, %v862_v56  ;;  %v2226_v21 = vpop.f32.mrf.mxu1  ;;  %v2156_v45 = vadd.f32 %v2155_v16, %v959_v29  ;;  %v245_v16 = vld [vmem:[#allocation5 + $0x608] sm:$0xff] }
 0x139   :  { %5072 = vmatprep.subr.msk.mxu1 %vm1286_vm0, %v864_v58  ;;  %4938 = vst [vmem:[#allocation8 + $0x8] sm:$0xff] %v4543_v4  ;;  %5070 = vmatpush1.msk.msra.mxu0 %vm1286_vm0, %v861_v60  ;;  %v2157_v33 = vpop.f32.mrf.mxu0  ;;  %v2227_v53 = vadd.f32 %v2226_v21, %v967_v32  ;;  %v393_v58 = vunpack.c.l.bf16 %v86_v36  ;;  %v866_v60 = vunpack.c.h.bf16 %v322_v51  ;;  %v5497_v4 = vld [vmem:[#allocation5 + $0x600] sm:$0xff]  ;;  %v979_v21 = vrot.slane %v5485_v15, %v5390_v61 }
 0x13a   :  { %5073 = vmatpush1.msk.msra.mxu1 %vm1286_vm0, %v863_v63  ;;  %3955 = vmatprep.subr.mxu0 %v784_v2  ;;  %v2228_v39 = vpop.f32.mrf.mxu1  ;;  %v2158_v46 = vadd.f32 %v2157_v33, %v963_v11  ;;  %v868_v63 = vunpack.c.h.bf16 %v323_v52  ;;  %v4306_v2 = vmax.f32 %v2156_v45, 0.0  ;;  %v712_v11 = vunpack.c.h.bf16 %v245_v16 }
 0x13b   :  { %4026 = vmatprep.subr.mxu1 %v786_v3  ;;  %3956 = vmatpush1.msra.mxu0 %v783_v5  ;;  %v2229_v56 = vadd.f32 %v2228_v39, %v971_v34  ;;  %v4308_v5 = vmax.f32 %v2227_v53, 0.0  ;;  %v709_v34 = vunpack.c.l.bf16 %v5497_v4  ;;  %v634_v36 = vunpack.c.h.bf16 %v206_v20 }
 0x13c   :  { %4027 = vmatpush1.msra.mxu1 %v785_v6  ;;  %3957 = vmatprep.subr.mxu0 %v706_v10  ;;  %v4307_v3 = vmax.f32 %v2158_v46, 0.0  ;;  %v865_v10 = vunpack.c.l.bf16 %v322_v51  ;;  %v631_v45 = vunpack.c.l.bf16 %v205_v19  ;;  %v633_v46 = vunpack.c.l.bf16 %v206_v20  ;;  %v127_v51 = vld [vmem:[#allocation5 + $0x258] sm:$0xff] }
 0x13d   :  { %4028 = vmatprep.subr.mxu1 %v708_v12  ;;  %3958 = vmatpush1.msra.mxu0 %v705_v17  ;;  %v4309_v6 = vmax.f32 %v2229_v56, 0.0  ;;  %v867_v12 = vunpack.c.l.bf16 %v323_v52  ;;  %v788_v17 = vunpack.c.h.bf16 %v283_v41  ;;  %v128_v52 = vld [vmem:[#allocation5 + $0x260] sm:$0xff] }
 0x13e   :  { %4029 = vmatpush1.msra.mxu1 %v707_v18  ;;  %3959 = vmatprep.subr.mxu0 %v628_v22  ;;  %v790_v18 = vunpack.c.h.bf16 %v284_v1  ;;  %v987_v22 = vrot.slane %v5485_v15, %v5393_v62  ;;  %v4544_v26 = vcombine.low %v4306_v2, %v4307_v3  ;;  %v167_v15 = vld [vmem:[#allocation5 + $0x398] sm:$0xff]  ;;  %v476_v2 = vunpack.c.h.bf16 %v127_v51 }
 0x13f   :  { %4030 = vmatprep.subr.mxu1 %v630_v23  ;;  %3960 = vmatpush1.msra.mxu0 %v627_v24  ;;  %v787_v23 = vunpack.c.l.bf16 %v283_v41  ;;  %v789_v24 = vunpack.c.l.bf16 %v284_v1  ;;  %v555_v41 = vunpack.c.l.bf16 %v167_v15  ;;  %v89_v1 = vld [vmem:[#allocation5 + $0x128] sm:$0xff]  ;;  %v478_v3 = vunpack.c.h.bf16 %v128_v52 }
 0x140   :  { %4031 = vmatpush1.msra.mxu1 %v629_v25  ;;  %3961 = vmatprep.subr.mxu0 %v550_v30  ;;  %v710_v25 = vunpack.c.h.bf16 %v5497_v4  ;;  %v166_v30 = vld [vmem:[#allocation5 + $0x390] sm:$0xff]  ;;  %v4554_v53 = vrot.slane %v4544_v26, %v5414_v27  ;;  %v399_v20 = vunpack.c.l.bf16 %v89_v1 }
 0x141   :  { %4032 = vmatprep.subr.mxu1 %v552_v31  ;;  %3962 = vmatpush1.msra.mxu0 %v549_v57  ;;  %v4545_v31 = vcombine.low %v4308_v5, %v4309_v6  ;;  %v711_v57 = vunpack.c.l.bf16 %v245_v16  ;;  %v475_v6 = vunpack.c.l.bf16 %v127_v51 }
 0x142   :  { %4033 = vmatpush1.msra.mxu1 %v551_v35  ;;  %3963 = vmatprep.subr.mxu0 %v472_v40  ;;  %v632_v35 = vunpack.c.h.bf16 %v205_v19  ;;  %v324_v19 = vld [vmem:[#allocation5 + $0x880] sm:$0x11] }
 0x143   :  { %4034 = vmatprep.subr.mxu1 %v474_v42  ;;  %3964 = vmatpush1.msra.mxu0 %v471_v43  ;;  %v4561_v56 = vrot.slane %v4545_v31, %v5414_v27  ;;  %v869_v26 = vunpack.c.l.bf16 %v324_v19 }
 0x144   :  { %4035 = vmatpush1.msra.mxu1 %v473_v44  ;;  %3965 = vmatprep.subr.mxu0 %v394_v49  ;;  %v554_v49 = vunpack.c.h.bf16 %v166_v30 }
 0x145   :  { %4036 = vmatprep.subr.mxu1 %v396_v50  ;;  %3966 = vmatpush1.msra.mxu0 %v393_v58  ;;  %v556_v50 = vunpack.c.h.bf16 %v167_v15  ;;  %v88_v58 = vld [vmem:[#allocation5 + $0x120] sm:$0xff]  ;;  %v207_v15 = vld [vmem:[#allocation5 + $0x4d8] sm:$0xff] }
 0x146   :  { %3999 = vmatprep.mubr.f32.mxu0 %v5185_v0  ;;  %4037 = vmatpush1.msra.mxu1 %v395_v59 }
 0x147   :  { %4070 = vmatprep.mubr.f32.mxu1 %v5185_v0  ;;  %5071 = vmatmul.mubr.msk.f32.vlgmr.msra.gmra.mxu0 %vm1282_vm1, %v5429_v38  ;;  %v2297_v28 = vpop.f32.mrf.mxu0 }
 0x148   :  { %5074 = vmatmul.mubr.msk.f32.vlgmr.msra.gmra.mxu1 %vm1282_vm1, %v5429_v38  ;;  %v2368_v29 = vpop.f32.mrf.mxu1  ;;  %5075 = vmatprep.subr.msk.mxu0 %vm1286_vm0, %v866_v60  ;;  %v2298_v32 = vadd.f32 %v2297_v28, %v975_v8  ;;  %v477_v8 = vunpack.c.l.bf16 %v128_v52  ;;  %v246_v28 = vld [vmem:[#allocation5 + $0x610] sm:$0xff] }
 0x149   :  { %5078 = vmatprep.subr.msk.mxu1 %vm1286_vm0, %v868_v63  ;;  %v2369_v33 = vadd.f32 %v2368_v29, %v983_v9  ;;  %5076 = vmatpush1.msk.msra.mxu0 %vm1286_vm0, %v865_v10  ;;  %v2299_v37 = vpop.f32.mrf.mxu0  ;;  %v553_v63 = vunpack.c.l.bf16 %v166_v30  ;;  %v398_v9 = vunpack.c.h.bf16 %v88_v58  ;;  %v4576_v10 = vcombine.low %v4554_v53, %v4561_v56 }
 0x14a   :  { %5079 = vmatpush1.msk.msra.mxu1 %vm1286_vm0, %v867_v12  ;;  %v2370_v39 = vpop.f32.mrf.mxu1  ;;  %4097 = vmatprep.subr.mxu0 %v788_v17  ;;  %v4310_v40 = vmax.f32 %v2298_v32, 0.0  ;;  %v2300_v43 = vadd.f32 %v2299_v37, %v979_v21  ;;  %v400_v12 = vunpack.c.h.bf16 %v89_v1  ;;  %v714_v31 = vunpack.c.h.bf16 %v246_v28  ;;  %v168_v32 = vld [vmem:[#allocation5 + $0x3a0] sm:$0xff] }
 0x14b   :  { %4168 = vmatprep.subr.mxu1 %v790_v18  ;;  %v4312_v42 = vmax.f32 %v2369_v33, 0.0  ;;  %v2371_v44 = vadd.f32 %v2370_v39, %v987_v22  ;;  %4098 = vmatpush1.msra.mxu0 %v787_v23  ;;  %v397_v18 = vunpack.c.l.bf16 %v88_v58  ;;  %v285_v22 = vld [vmem:[#allocation5 + $0x748] sm:$0xff]  ;;  %v4584_v23 = vrot.slane %v4576_v10, %v5414_v27 }
 0x14c   :  { %4169 = vmatpush1.msra.mxu1 %v789_v24  ;;  %4099 = vmatprep.subr.mxu0 %v710_v25  ;;  %v4311_v59 = vmax.f32 %v2300_v43, 0.0  ;;  %v870_v24 = vunpack.c.h.bf16 %v324_v19  ;;  %v792_v29 = vunpack.c.h.bf16 %v285_v22  ;;  %v791_v30 = vunpack.c.l.bf16 %v285_v22 }
 0x14d   :  { %4170 = vmatprep.subr.mxu1 %v712_v11  ;;  %v4313_v60 = vmax.f32 %v2371_v44, 0.0  ;;  %4100 = vmatpush1.msra.mxu0 %v709_v34  ;;  %v713_v33 = vunpack.c.l.bf16 %v246_v28  ;;  %v875_v34 = vld [vmem:[#allocation7 + $0x18] sm:$0xff]  ;;  %v635_v37 = vunpack.c.l.bf16 %v207_v15  ;;  %v558_v39 = vunpack.c.h.bf16 %v168_v32 }
 0x14e   :  { %4171 = vmatpush1.msra.mxu1 %v711_v57  ;;  %4101 = vmatprep.subr.mxu0 %v632_v35  ;;  %v4546_v4 = vcombine.low %v4310_v40, %v4311_v59  ;;  %v129_v40 = vld [vmem:[#allocation5 + $0x268] sm:$0xff]  ;;  %v991_v43 = vrot.slane %v875_v34, %v5355_v47  ;;  %v999_v44 = vrot.slane %v875_v34, %v5365_v13 }
 0x14f   :  { %4172 = vmatprep.subr.mxu1 %v634_v36  ;;  %v4547_v5 = vcombine.low %v4312_v42, %v4313_v60  ;;  %4102 = vmatpush1.msra.mxu0 %v631_v45  ;;  %v636_v36 = vunpack.c.h.bf16 %v207_v15  ;;  %v90_v42 = vld [vmem:[#allocation5 + $0x130] sm:$0xff]  ;;  %v1003_v45 = vrot.slane %v875_v34, %v5368_v14  ;;  %v480_v51 = vunpack.c.h.bf16 %v129_v40 }
 0x150   :  { %4173 = vmatpush1.msra.mxu1 %v633_v46  ;;  %4103 = vmatprep.subr.mxu0 %v554_v49  ;;  %v4568_v16 = vrot.slane %v4546_v4, %v5414_v27  ;;  %v557_v46 = vunpack.c.l.bf16 %v168_v32  ;;  %v479_v52 = vunpack.c.l.bf16 %v129_v40  ;;  %v402_v53 = vunpack.c.h.bf16 %v90_v42 }
 0x151   :  { %4174 = vmatprep.subr.mxu1 %v556_v50  ;;  %v4575_v17 = vrot.slane %v4547_v5, %v5414_v27  ;;  %4104 = vmatpush1.msra.mxu0 %v553_v63  ;;  %v401_v63 = vunpack.c.l.bf16 %v90_v42  ;;  %v1015_v1 = vrot.slane %v875_v34, %v5386_v55 }
 0x152   :  { %4175 = vmatpush1.msra.mxu1 %v555_v41  ;;  %4105 = vmatprep.subr.mxu0 %v476_v2  ;;  %v1007_v41 = vrot.slane %v875_v34, %v5383_v54 }
 0x153   :  { %4176 = vmatprep.subr.mxu1 %v478_v3  ;;  %v4577_v21 = vcombine.low %v4568_v16, %v4575_v17  ;;  %4106 = vmatpush1.msra.mxu0 %v475_v6  ;;  %v1011_v6 = vrot.slane %v875_v34, %v5390_v61 }
 0x154   :  { %4177 = vmatpush1.msra.mxu1 %v477_v8  ;;  %4107 = vmatprep.subr.mxu0 %v398_v9  ;;  %v1019_v8 = vrot.slane %v875_v34, %v5393_v62 }
 0x155   :  { %4178 = vmatprep.subr.mxu1 %v400_v12  ;;  %v4591_v25 = vrot.slane %v4577_v21, %v5414_v27  ;;  %4108 = vmatpush1.msra.mxu0 %v397_v18 }
 0x156   :  { %4141 = vmatprep.mubr.f32.mxu0 %v5185_v0  ;;  %4179 = vmatpush1.msra.mxu1 %v399_v20 }
 0x157   :  { %4212 = vmatprep.mubr.f32.mxu1 %v5185_v0  ;;  %v4592_v11 = vcombine.low %v4584_v23, %v4591_v25  ;;  %5077 = vmatmul.mubr.msk.f32.vlgmr.msra.gmra.mxu0 %vm1282_vm1, %v5429_v38  ;;  %v2439_v57 = vpop.f32.mrf.mxu0 }
 0x158   :  { %5080 = vmatmul.mubr.msk.f32.vlgmr.msra.gmra.mxu1 %vm1282_vm1, %v5429_v38  ;;  %5081 = vmatprep.subr.msk.mxu0 %vm1286_vm0, %v870_v24  ;;  %v2510_v35 = vpop.f32.mrf.mxu1  ;;  %v2440_v56 = vadd.f32 %v2439_v57, %v991_v43 }
 0x159   :  { %4939 = vst [vmem:[#allocation8 + $0x10] sm:$0xff] %v4592_v11  ;;  %4283 = vmatprep.mubr.f32.mxu0 %v5185_v0  ;;  %5082 = vmatpush1.msk.msra.mxu0 %vm1286_vm0, %v869_v26  ;;  %v995_v0 = vrot.slane %v875_v34, %v5358_v7  ;;  %v2441_v49 = vpop.f32.mrf.mxu0  ;;  %v2511_v58 = vadd.f32 %v2510_v35, %v999_v44  ;;  %v876_v35 = vld [vmem:[#allocation7 + $0x20] sm:$0xff] }
 0x15a   :  { %4239 = vmatprep.subr.mxu0 %v792_v29  ;;  %v2512_v50 = vpop.f32.mrf.mxu1  ;;  %v4314_v2 = vmax.f32 %v2440_v56, 0.0  ;;  %v1031_v40 = vrot.slane %v876_v35, %v5365_v13  ;;  %v1027_v42 = vrot.slane %v876_v35, %v5358_v7  ;;  %v1035_v43 = vrot.slane %v876_v35, %v5368_v14 }
 0x15b   :  { %4240 = vmatpush1.msra.mxu0 %v791_v30  ;;  %v2442_v59 = vadd.f32 %v2441_v49, %v995_v0  ;;  %v2513_v60 = vadd.f32 %v2512_v50, %v1003_v45  ;;  %v4316_v3 = vmax.f32 %v2511_v58, 0.0 }
 0x15c   :  { %4241 = vmatprep.subr.mxu0 %v714_v31 }
 0x15d   :  { %4242 = vmatpush1.msra.mxu0 %v713_v33  ;;  %v4315_v4 = vmax.f32 %v2442_v59, 0.0  ;;  %v4317_v5 = vmax.f32 %v2513_v60, 0.0  ;;  %v1043_v60 = vrot.slane %v876_v35, %v5390_v61 }
 0x15e   :  { %4243 = vmatprep.subr.mxu0 %v636_v36 }
 0x15f   :  { %4244 = vmatpush1.msra.mxu0 %v635_v37  ;;  %v4593_v12 = vcombine.low %v4314_v2, %v4315_v4  ;;  %v4594_v16 = vcombine.low %v4316_v3, %v4317_v5 }
 0x160   :  { %4245 = vmatprep.subr.mxu0 %v558_v39  ;;  %v1023_v39 = vrot.slane %v876_v35, %v5355_v47 }
 0x161   :  { %4246 = vmatpush1.msra.mxu0 %v557_v46  ;;  %v4603_v25 = vrot.slane %v4593_v12, %v5414_v27 }
 0x162   :  { %4247 = vmatprep.subr.mxu0 %v480_v51  ;;  %v1039_v51 = vrot.slane %v876_v35, %v5383_v54 }
 0x163   :  { %4248 = vmatpush1.msra.mxu0 %v479_v52  ;;  %v1047_v52 = vrot.slane %v876_v35, %v5386_v55 }
 0x164   :  { %4249 = vmatprep.subr.mxu0 %v402_v53 }
 0x165   :  { %4250 = vmatpush1.msra.mxu0 %v401_v63  ;;  %v1051_v63 = vrot.slane %v876_v35, %v5393_v62 }
 0x166   :  { %5083 = vmatmul.mubr.msk.f32.vlgmr.msra.gmra.mxu0 %vm1282_vm1, %v5429_v38  ;;  %v4610_v38 = vrot.slane %v4594_v16, %v5414_v27 }
 0x167   :  { %v2581_v9 = vpop.f32.mrf.mxu0 }
 0x168   :  { %v2652_v10 = vpop.f32.mrf.mxu1  ;;  %v2582_v17 = vadd.f32 %v2581_v9, %v1007_v41  ;;  %v4625_v30 = vcombine.low %v4603_v25, %v4610_v38 }
 0x169   :  { %v2653_v18 = vadd.f32 %v2652_v10, %v1015_v1  ;;  %v2583_v19 = vpop.f32.mrf.mxu0 }
 0x16a   :  { %v2654_v20 = vpop.f32.mrf.mxu1  ;;  %v4318_v21 = vmax.f32 %v2582_v17, 0.0  ;;  %v2584_v23 = vadd.f32 %v2583_v19, %v1011_v6  ;;  %v4633_v33 = vrot.slane %v4625_v30, %v5414_v27 }
 0x16b   :  { %v4320_v22 = vmax.f32 %v2653_v18, 0.0  ;;  %v2655_v24 = vadd.f32 %v2654_v20, %v1019_v8 }
 0x16c   :  { %v4319_v26 = vmax.f32 %v2584_v23, 0.0 }
 0x16d   :  { %v4321_v28 = vmax.f32 %v2655_v24, 0.0 }
 0x16e   :  { %v4595_v29 = vcombine.low %v4318_v21, %v4319_v26 }
 0x16f   :  { %v4596_v11 = vcombine.low %v4320_v22, %v4321_v28 }
 0x170   :  { %v4617_v15 = vrot.slane %v4595_v29, %v5414_v27 }
 0x171   :  { %v4624_v31 = vrot.slane %v4596_v11, %v5414_v27  ;;  %v877_v11 = vld [vmem:[#allocation7 + $0x28] sm:$0xff] }
 0x173   :  { %v4626_v32 = vcombine.low %v4617_v15, %v4624_v31  ;;  %v1055_v31 = vrot.slane %v877_v11, %v5355_v47 }
 0x175   :  { %v4640_v34 = vrot.slane %v4626_v32, %v5414_v27  ;;  %v1063_v32 = vrot.slane %v877_v11, %v5365_v13 }
 0x177   :  { %v4641_v57 = vcombine.low %v4633_v33, %v4640_v34  ;;  %v2723_v36 = vpop.f32.mrf.mxu0  ;;  %v1059_v33 = vrot.slane %v877_v11, %v5358_v7  ;;  %v1067_v34 = vrot.slane %v877_v11, %v5368_v14 }
 0x178   :  { %v2794_v37 = vpop.f32.mrf.mxu1  ;;  %v2724_v45 = vadd.f32 %v2723_v36, %v1023_v39 }
 0x179   :  { %4940 = vst [vmem:[#allocation8 + $0x18] sm:$0xff] %v4641_v57  ;;  %v2725_v44 = vpop.f32.mrf.mxu0  ;;  %v2795_v46 = vadd.f32 %v2794_v37, %v1031_v40 }
 0x17a   :  { %v2796_v0 = vpop.f32.mrf.mxu1  ;;  %v2726_v49 = vadd.f32 %v2725_v44, %v1027_v42  ;;  %v4322_v53 = vmax.f32 %v2724_v45, 0.0  ;;  %v1071_v42 = vrot.slane %v877_v11, %v5383_v54 }
 0x17b   :  { %v2797_v50 = vadd.f32 %v2796_v0, %v1035_v43  ;;  %v4324_v56 = vmax.f32 %v2795_v46, 0.0  ;;  %v1079_v43 = vrot.slane %v877_v11, %v5386_v55 }
 0x17c   :  { %v4323_v58 = vmax.f32 %v2726_v49, 0.0  ;;  %v1075_v49 = vrot.slane %v877_v11, %v5390_v61 }
 0x17d   :  { %v4325_v59 = vmax.f32 %v2797_v50, 0.0  ;;  %v1083_v50 = vrot.slane %v877_v11, %v5393_v62 }
 0x17e   :  { %v4642_v2 = vcombine.low %v4322_v53, %v4323_v58 }
 0x17f   :  { %v4643_v3 = vcombine.low %v4324_v56, %v4325_v59 }
 0x180   :  { %v4652_v17 = vrot.slane %v4642_v2, %v5414_v27 }
 0x181   :  { %v4659_v18 = vrot.slane %v4643_v3, %v5414_v27 }
 0x183   :  { %v4674_v23 = vcombine.low %v4652_v17, %v4659_v18 }
 0x185   :  { %v4682_v26 = vrot.slane %v4674_v23, %v5414_v27 }
 0x187   :  { %v2865_v41 = vpop.f32.mrf.mxu0 }
 0x188   :  { %v2936_v1 = vpop.f32.mrf.mxu1  ;;  %v2866_v4 = vadd.f32 %v2865_v41, %v1039_v51 }
 0x189   :  { %v2937_v5 = vadd.f32 %v2936_v1, %v1047_v52  ;;  %v2867_v6 = vpop.f32.mrf.mxu0 }
 0x18a   :  { %v2938_v8 = vpop.f32.mrf.mxu1  ;;  %v4326_v9 = vmax.f32 %v2866_v4, 0.0  ;;  %v2868_v12 = vadd.f32 %v2867_v6, %v1043_v60 }
 0x18b   :  { %v4328_v10 = vmax.f32 %v2937_v5, 0.0  ;;  %v2939_v16 = vadd.f32 %v2938_v8, %v1051_v63 }
 0x18c   :  { %v4327_v19 = vmax.f32 %v2868_v12, 0.0 }
 0x18d   :  { %v4329_v20 = vmax.f32 %v2939_v16, 0.0 }
 0x18e   :  { %v4644_v21 = vcombine.low %v4326_v9, %v4327_v19 }
 0x18f   :  { %v4645_v22 = vcombine.low %v4328_v10, %v4329_v20 }
 0x190   :  { %v4666_v24 = vrot.slane %v4644_v21, %v5414_v27 }
 0x191   :  { %v4673_v25 = vrot.slane %v4645_v22, %v5414_v27  ;;  %v878_v22 = vld [vmem:[#allocation7 + $0x30] sm:$0xff] }
 0x193   :  { %v4675_v38 = vcombine.low %v4666_v24, %v4673_v25  ;;  %v1087_v25 = vrot.slane %v878_v22, %v5355_v47 }
 0x195   :  { %v4689_v28 = vrot.slane %v4675_v38, %v5414_v27  ;;  %v1095_v38 = vrot.slane %v878_v22, %v5365_v13 }
 0x197   :  { %v4690_v29 = vcombine.low %v4682_v26, %v4689_v28  ;;  %v3007_v30 = vpop.f32.mrf.mxu0  ;;  %v1091_v26 = vrot.slane %v878_v22, %v5358_v7  ;;  %v1099_v28 = vrot.slane %v878_v22, %v5368_v14 }
 0x198   :  { %v3078_v15 = vpop.f32.mrf.mxu1  ;;  %v3008_v36 = vadd.f32 %v3007_v30, %v1055_v31 }
 0x199   :  { %4941 = vst [vmem:[#allocation8 + $0x20] sm:$0xff] %v4690_v29  ;;  %v3009_v57 = vpop.f32.mrf.mxu0  ;;  %v3079_v37 = vadd.f32 %v3078_v15, %v1063_v32 }
 0x19a   :  { %v3080_v35 = vpop.f32.mrf.mxu1  ;;  %v3010_v39 = vadd.f32 %v3009_v57, %v1059_v33  ;;  %v4330_v44 = vmax.f32 %v3008_v36, 0.0  ;;  %v1103_v33 = vrot.slane %v878_v22, %v5383_v54 }
 0x19b   :  { %v3081_v40 = vadd.f32 %v3080_v35, %v1067_v34  ;;  %v4332_v0 = vmax.f32 %v3079_v37, 0.0  ;;  %v1111_v34 = vrot.slane %v878_v22, %v5386_v55 }
 0x19c   :  { %v4331_v45 = vmax.f32 %v3010_v39, 0.0  ;;  %v1107_v39 = vrot.slane %v878_v22, %v5390_v61 }
 0x19d   :  { %v4333_v46 = vmax.f32 %v3081_v40, 0.0  ;;  %v1115_v40 = vrot.slane %v878_v22, %v5393_v62 }
 0x19e   :  { %v4691_v53 = vcombine.low %v4330_v44, %v4331_v45 }
 0x19f   :  { %v4692_v56 = vcombine.low %v4332_v0, %v4333_v46 }
 0x1a0   :  { %v4701_v4 = vrot.slane %v4691_v53, %v5414_v27 }
 0x1a1   :  { %v4708_v5 = vrot.slane %v4692_v56, %v5414_v27 }
 0x1a3   :  { %v4723_v12 = vcombine.low %v4701_v4, %v4708_v5 }
 0x1a5   :  { %v4731_v19 = vrot.slane %v4723_v12, %v5414_v27 }
 0x1a7   :  { %v3149_v51 = vpop.f32.mrf.mxu0 }
 0x1a8   :  { %v3220_v52 = vpop.f32.mrf.mxu1  ;;  %v3150_v58 = vadd.f32 %v3149_v51, %v1071_v42 }
 0x1a9   :  { %v3221_v59 = vadd.f32 %v3220_v52, %v1079_v43  ;;  %v3151_v60 = vpop.f32.mrf.mxu0 }
 0x1aa   :  { %v3222_v63 = vpop.f32.mrf.mxu1  ;;  %v4334_v41 = vmax.f32 %v3150_v58, 0.0  ;;  %v3152_v2 = vadd.f32 %v3151_v60, %v1075_v49 }
 0x1ab   :  { %v4336_v1 = vmax.f32 %v3221_v59, 0.0  ;;  %v3223_v3 = vadd.f32 %v3222_v63, %v1083_v50 }
 0x1ac   :  { %v4335_v6 = vmax.f32 %v3152_v2, 0.0 }
 0x1ad   :  { %v4337_v8 = vmax.f32 %v3223_v3, 0.0 }
 0x1ae   :  { %v4693_v9 = vcombine.low %v4334_v41, %v4335_v6 }
 0x1af   :  { %v4694_v10 = vcombine.low %v4336_v1, %v4337_v8 }
 0x1b0   :  { %v4715_v16 = vrot.slane %v4693_v9, %v5414_v27 }
 0x1b1   :  { %v4722_v17 = vrot.slane %v4694_v10, %v5414_v27  ;;  %v879_v10 = vld [vmem:[#allocation7 + $0x38] sm:$0xff] }
 0x1b3   :  { %v4724_v18 = vcombine.low %v4715_v16, %v4722_v17  ;;  %v1119_v17 = vrot.slane %v879_v10, %v5355_v47 }
 0x1b5   :  { %v4738_v20 = vrot.slane %v4724_v18, %v5414_v27  ;;  %v1127_v18 = vrot.slane %v879_v10, %v5365_v13 }
 0x1b7   :  { %v4739_v21 = vcombine.low %v4731_v19, %v4738_v20  ;;  %v3291_v23 = vpop.f32.mrf.mxu0  ;;  %v1123_v19 = vrot.slane %v879_v10, %v5358_v7  ;;  %v1131_v20 = vrot.slane %v879_v10, %v5368_v14 }
 0x1b8   :  { %v3362_v24 = vpop.f32.mrf.mxu1  ;;  %v3292_v30 = vadd.f32 %v3291_v23, %v1087_v25 }
 0x1b9   :  { %4942 = vst [vmem:[#allocation8 + $0x28] sm:$0xff] %v4739_v21  ;;  %v3293_v29 = vpop.f32.mrf.mxu0  ;;  %v3363_v15 = vadd.f32 %v3362_v24, %v1095_v38 }
 0x1ba   :  { %v3364_v11 = vpop.f32.mrf.mxu1  ;;  %v3294_v31 = vadd.f32 %v3293_v29, %v1091_v26  ;;  %v4338_v57 = vmax.f32 %v3292_v30, 0.0  ;;  %v1135_v26 = vrot.slane %v879_v10, %v5383_v54 }
 0x1bb   :  { %v3365_v32 = vadd.f32 %v3364_v11, %v1099_v28  ;;  %v4340_v35 = vmax.f32 %v3363_v15, 0.0  ;;  %v1143_v28 = vrot.slane %v879_v10, %v5386_v55 }
 0x1bc   :  { %v4339_v36 = vmax.f32 %v3294_v31, 0.0  ;;  %v1139_v31 = vrot.slane %v879_v10, %v5390_v61 }
 0x1bd   :  { %v4341_v37 = vmax.f32 %v3365_v32, 0.0  ;;  %v1147_v32 = vrot.slane %v879_v10, %v5393_v62 }
 0x1be   :  { %v4740_v44 = vcombine.low %v4338_v57, %v4339_v36 }
 0x1bf   :  { %v4741_v0 = vcombine.low %v4340_v35, %v4341_v37 }
 0x1c0   :  { %v4750_v58 = vrot.slane %v4740_v44, %v5414_v27 }
 0x1c1   :  { %v4757_v59 = vrot.slane %v4741_v0, %v5414_v27 }
 0x1c3   :  { %v4772_v2 = vcombine.low %v4750_v58, %v4757_v59 }
 0x1c5   :  { %v4780_v6 = vrot.slane %v4772_v2, %v5414_v27 }
 0x1c7   :  { %v3433_v42 = vpop.f32.mrf.mxu0 }
 0x1c8   :  { %v3504_v43 = vpop.f32.mrf.mxu1  ;;  %v3434_v45 = vadd.f32 %v3433_v42, %v1103_v33 }
 0x1c9   :  { %v3505_v46 = vadd.f32 %v3504_v43, %v1111_v34  ;;  %v3435_v49 = vpop.f32.mrf.mxu0 }
 0x1ca   :  { %v3506_v50 = vpop.f32.mrf.mxu1  ;;  %v4342_v51 = vmax.f32 %v3434_v45, 0.0  ;;  %v3436_v53 = vadd.f32 %v3435_v49, %v1107_v39 }
 0x1cb   :  { %v4344_v52 = vmax.f32 %v3505_v46, 0.0  ;;  %v3507_v56 = vadd.f32 %v3506_v50, %v1115_v40 }
 0x1cc   :  { %v4343_v60 = vmax.f32 %v3436_v53, 0.0 }
 0x1cd   :  { %v4345_v63 = vmax.f32 %v3507_v56, 0.0 }
 0x1ce   :  { %v4742_v41 = vcombine.low %v4342_v51, %v4343_v60 }
 0x1cf   :  { %v4743_v1 = vcombine.low %v4344_v52, %v4345_v63 }
 0x1d0   :  { %v4764_v3 = vrot.slane %v4742_v41, %v5414_v27 }
 0x1d1   :  { %v4771_v4 = vrot.slane %v4743_v1, %v5414_v27  ;;  %v880_v1 = vld [vmem:[#allocation7 + $0x40] sm:$0xff] }
 0x1d3   :  { %v4773_v5 = vcombine.low %v4764_v3, %v4771_v4  ;;  %v1151_v4 = vrot.slane %v880_v1, %v5355_v47 }
 0x1d5   :  { %v4787_v8 = vrot.slane %v4773_v5, %v5414_v27  ;;  %v1159_v5 = vrot.slane %v880_v1, %v5365_v13 }
 0x1d7   :  { %v4788_v9 = vcombine.low %v4780_v6, %v4787_v8  ;;  %v3575_v12 = vpop.f32.mrf.mxu0  ;;  %v1155_v6 = vrot.slane %v880_v1, %v5358_v7  ;;  %v1163_v8 = vrot.slane %v880_v1, %v5368_v14 }
 0x1d8   :  { %v3646_v16 = vpop.f32.mrf.mxu1  ;;  %v3576_v23 = vadd.f32 %v3575_v12, %v1119_v17 }
 0x1d9   :  { %4943 = vst [vmem:[#allocation8 + $0x30] sm:$0xff] %v4788_v9  ;;  %v3577_v21 = vpop.f32.mrf.mxu0  ;;  %v3647_v24 = vadd.f32 %v3646_v16, %v1127_v18 }
 0x1da   :  { %v3648_v22 = vpop.f32.mrf.mxu1  ;;  %v3578_v25 = vadd.f32 %v3577_v21, %v1123_v19  ;;  %v4346_v29 = vmax.f32 %v3576_v23, 0.0  ;;  %v1167_v19 = vrot.slane %v880_v1, %v5383_v54 }
 0x1db   :  { %v3649_v38 = vadd.f32 %v3648_v22, %v1131_v20  ;;  %v4348_v11 = vmax.f32 %v3647_v24, 0.0  ;;  %v1175_v20 = vrot.slane %v880_v1, %v5386_v55 }
 0x1dc   :  { %v4347_v30 = vmax.f32 %v3578_v25, 0.0  ;;  %v1171_v25 = vrot.slane %v880_v1, %v5390_v61 }
 0x1dd   :  { %v4349_v15 = vmax.f32 %v3649_v38, 0.0  ;;  %v1179_v38 = vrot.slane %v880_v1, %v5393_v62 }
 0x1de   :  { %v4789_v57 = vcombine.low %v4346_v29, %v4347_v30 }
 0x1df   :  { %v4790_v35 = vcombine.low %v4348_v11, %v4349_v15 }
 0x1e0   :  { %v4799_v45 = vrot.slane %v4789_v57, %v5414_v27 }
 0x1e1   :  { %v4806_v46 = vrot.slane %v4790_v35, %v5414_v27 }
 0x1e3   :  { %v4821_v53 = vcombine.low %v4799_v45, %v4806_v46 }
 0x1e5   :  { %v4829_v60 = vrot.slane %v4821_v53, %v5414_v27 }
 0x1e7   :  { %v3717_v33 = vpop.f32.mrf.mxu0 }
 0x1e8   :  { %v3788_v34 = vpop.f32.mrf.mxu1  ;;  %v3718_v36 = vadd.f32 %v3717_v33, %v1135_v26 }
 0x1e9   :  { %v3789_v37 = vadd.f32 %v3788_v34, %v1143_v28  ;;  %v3719_v39 = vpop.f32.mrf.mxu0 }
 0x1ea   :  { %v3790_v40 = vpop.f32.mrf.mxu1  ;;  %v4350_v42 = vmax.f32 %v3718_v36, 0.0  ;;  %v3720_v44 = vadd.f32 %v3719_v39, %v1139_v31 }
 0x1eb   :  { %v4352_v43 = vmax.f32 %v3789_v37, 0.0  ;;  %v3791_v0 = vadd.f32 %v3790_v40, %v1147_v32 }
 0x1ec   :  { %v4351_v49 = vmax.f32 %v3720_v44, 0.0 }
 0x1ed   :  { %v4353_v50 = vmax.f32 %v3791_v0, 0.0 }
 0x1ee   :  { %v4791_v51 = vcombine.low %v4350_v42, %v4351_v49 }
 0x1ef   :  { %v4792_v52 = vcombine.low %v4352_v43, %v4353_v50  ;;  %v881_v50 = vld [vmem:[#allocation7 + $0x48] sm:$0x3f] }
 0x1f0   :  { %v4813_v56 = vrot.slane %v4791_v51, %v5414_v27  ;;  %v1183_v53 = vrot.slane %v881_v50, %v5355_v47 }
 0x1f1   :  { %v4820_v58 = vrot.slane %v4792_v52, %v5414_v27 }
 0x1f3   :  { %v4822_v59 = vcombine.low %v4813_v56, %v4820_v58  ;;  %v1191_v56 = vrot.slane %v881_v50, %v5365_v13  ;;  %v1187_v58 = vrot.slane %v881_v50, %v5358_v7  ;;  %v1203_v13 = vrot.slane %v881_v50, %v5390_v61 }
 0x1f5   :  { %v4836_v63 = vrot.slane %v4822_v59, %v5414_v27  ;;  %v1195_v59 = vrot.slane %v881_v50, %v5368_v14 }
 0x1f7   :  { %v4837_v41 = vcombine.low %v4829_v60, %v4836_v63  ;;  %v3859_v2 = vpop.f32.mrf.mxu0 }
 0x1f8   :  { %v3930_v3 = vpop.f32.mrf.mxu1  ;;  %v3860_v12 = vadd.f32 %v3859_v2, %v1151_v4 }
 0x1f9   :  { %4944 = vst [vmem:[#allocation8 + $0x38] sm:$0xff] %v4837_v41  ;;  %v3861_v9 = vpop.f32.mrf.mxu0  ;;  %v3931_v16 = vadd.f32 %v3930_v3, %v1159_v5 }
 0x1fa   :  { %v3932_v10 = vpop.f32.mrf.mxu1  ;;  %v3862_v17 = vadd.f32 %v3861_v9, %v1155_v6  ;;  %v4354_v21 = vmax.f32 %v3860_v12, 0.0  ;;  %v1199_v9 = vrot.slane %v881_v50, %v5383_v54 }
 0x1fb   :  { %v3933_v18 = vadd.f32 %v3932_v10, %v1163_v8  ;;  %v4356_v22 = vmax.f32 %v3931_v16, 0.0 }
 0x1fc   :  { %v4355_v23 = vmax.f32 %v3862_v17, 0.0 }
 0x1fd   :  { %v4357_v24 = vmax.f32 %v3933_v18, 0.0 }
 0x1fe   :  { %v4838_v29 = vcombine.low %v4354_v21, %v4355_v23 }
 0x1ff   :  { %v4839_v11 = vcombine.low %v4356_v22, %v4357_v24 }
 0x200   :  { %v4848_v35 = vrot.slane %v4838_v29, %v5414_v27 }
 0x201   :  { %v4855_v36 = vrot.slane %v4839_v11, %v5414_v27 }
 0x203   :  { %v4870_v42 = vcombine.low %v4848_v35, %v4855_v36 }
 0x205   :  { %v4878_v45 = vrot.slane %v4870_v42, %v5414_v27 }
 0x207   :  { %v4001_v26 = vpop.f32.mrf.mxu0 }
 0x208   :  { %v4072_v28 = vpop.f32.mrf.mxu1  ;;  %v4002_v30 = vadd.f32 %v4001_v26, %v1167_v19 }
 0x209   :  { %v4073_v15 = vadd.f32 %v4072_v28, %v1175_v20  ;;  %v4003_v31 = vpop.f32.mrf.mxu0 }
 0x20a   :  { %v4074_v32 = vpop.f32.mrf.mxu1  ;;  %v4358_v33 = vmax.f32 %v4002_v30, 0.0  ;;  %v4004_v57 = vadd.f32 %v4003_v31, %v1171_v25 }
 0x20b   :  { %v4360_v34 = vmax.f32 %v4073_v15, 0.0  ;;  %v4075_v55 = vadd.f32 %v4074_v32, %v1179_v38 }
 0x20c   :  { %v4359_v37 = vmax.f32 %v4004_v57, 0.0 }
 0x20d   :  { %v4361_v39 = vmax.f32 %v4075_v55, 0.0 }
 0x20e   :  { %v4840_v40 = vcombine.low %v4358_v33, %v4359_v37 }
 0x20f   :  { %v4841_v62 = vcombine.low %v4360_v34, %v4361_v39 }
 0x210   :  { %v4862_v43 = vrot.slane %v4840_v40, %v5414_v27 }
 0x211   :  { %v4869_v44 = vrot.slane %v4841_v62, %v5414_v27 }
 0x213   :  { %v4871_v0 = vcombine.low %v4862_v43, %v4869_v44 }
 0x215   :  { %v4885_v46 = vrot.slane %v4871_v0, %v5414_v27 }
 0x217   :  { %v4886_v49 = vcombine.low %v4878_v45, %v4885_v46  ;;  %v4143_v51 = vpop.f32.mrf.mxu0 }
 0x218   :  { %v4214_v52 = vpop.f32.mrf.mxu1  ;;  %v4144_v41 = vadd.f32 %v4143_v51, %v1183_v53 }
 0x219   :  { %4945 = vst [vmem:[#allocation8 + $0x40] sm:$0xff] %v4886_v49  ;;  %v4145_v60 = vpop.f32.mrf.mxu0  ;;  %v4215_v1 = vadd.f32 %v4214_v52, %v1191_v56 }
 0x21a   :  { %v4216_v63 = vpop.f32.mrf.mxu1  ;;  %v4146_v2 = vadd.f32 %v4145_v60, %v1187_v58  ;;  %v4362_v4 = vmax.f32 %v4144_v41, 0.0 }
 0x21b   :  { %v4217_v3 = vadd.f32 %v4216_v63, %v1195_v59  ;;  %v4364_v5 = vmax.f32 %v4215_v1, 0.0 }
 0x21c   :  { %v4363_v6 = vmax.f32 %v4146_v2, 0.0 }
 0x21d   :  { %v4365_v8 = vmax.f32 %v4217_v3, 0.0 }
 0x21e   :  { %v4887_v10 = vcombine.low %v4362_v4, %v4363_v6 }
 0x21f   :  { %v4888_v47 = vcombine.low %v4364_v5, %v4365_v8 }
 0x220   :  { %v4896_v14 = vrot.slane %v4887_v10, %v5414_v27 }
 0x221   :  { %v4903_v17 = vrot.slane %v4888_v47, %v5414_v27 }
 0x223   :  { %v4911_v21 = vcombine.low %v4896_v14, %v4903_v17 }
 0x225   :  { %v4918_v54 = vrot.slane %v4911_v21, %v5414_v27 }
 0x226   :  { %v4285_v12 = vpop.f32.mrf.mxu0 }
 0x227   :  { %v4286_v7 = vadd.f32 %v4285_v12, %v1199_v9 }
 0x228   :  { %v4287_v16 = vpop.f32.mrf.mxu0 }
 0x229   :  { %v4288_v18 = vadd.f32 %v4287_v16, %v1203_v13  ;;  %v4366_v19 = vmax.f32 %v4286_v7, 0.0 }
 0x22b   :  { %v4367_v20 = vmax.f32 %v4288_v18, 0.0 }
 0x22d   :  { %v4889_v22 = vcombine.low %v4366_v19, %v4367_v20 }
 0x22f   :  { %v4910_v23 = vrot.slane %v4889_v22, %v5414_v27 }
 0x231   :  { %v4925_v61 = vrot.slane %v4910_v23, %v5414_v27 }
 0x233   :  { %v4926_v24 = vcombine.low %v4918_v54, %v4925_v61 }
 0x235   :  { %4950 = vst.msk [vmem:[#allocation8 + $0x48] sm:$0x3f] %vm4948_vm2, %v4926_v24 }
 0x236   :  { %5165 = shalt.err (!%p5162_p5)
}
 0x237   :  { %4960 = dma.vmem_to_hbm [thread:$0]  %s4958_s2, 1248, %s5638_s3, [#allocation4]  }
 0x238   :  { %5178 = dma.done.wait [#allocation4], 1248  }
 0x239   :  { %5179 = vsyncadd [#allocation4], 4294966048 }
 0x23a   :  { %4964 = vsyncpa [#allocation3], 1 }
 0x23b   :  { %4965 = vsyncpa [#allocation6], 1 }
 0x23c   :  { %4966 = vsyncpa [#allocation4], 1 }

</bundles_post_ra>
